<compile_context>
chip_gen: v6e
topology: v6e:2x2x1
jax: 0.10.0
libtpu: 0.0.40
codegen_flags: <defaults>
</compile_context>

<pallas_src>
import functools

import jax
import jax.numpy as jnp
from jax import lax
from jax.experimental import pallas as pl
from jax.experimental.pallas import tpu as pltpu


def bidir_lstm_kernel(x_ref, wih_ref, b_ref, whh_ref, out_ref, hid_ref,
                      gates_ref, *, unroll):
    """One batch tile: bidirectional single-layer LSTM + fused max-pool over time.

    x_ref:     (T, bt, E)   embedded inputs (f32)
    wih_ref:   (E, 8H)      [W_ih_fwd | W_ih_bwd]                 (f32 or bf16)
    b_ref:     (1, 8H)      (b_ih + b_hh) folded, fwd|bwd          (f32)
    whh_ref:   (2H, 8H)     block-diag [[W_hh_f, 0], [0, W_hh_b]]  (f32 or bf16)
    out_ref:   (T, bt, 2H)  fwd half in [..., :H], bwd half in [..., H:]
    hid_ref:   (bt, 2H)     max over time of output (args.max_pool)
    gates_ref: (T, bt, 8H)  scratch: pre-projected input gates, both directions
    """
    T, B, E = x_ref.shape
    G8 = wih_ref.shape[1]
    H = G8 // 8
    G = 4 * H
    mm_dtype = wih_ref.dtype

    # ---- 1) Input projection for BOTH directions as ONE matmul.
    # (T*bt, E) x (E, 8H) fills MXU rows; biases folded; one gates-scratch write.
    x2d = x_ref[...].reshape(T * B, E).astype(mm_dtype)
    proj = jnp.dot(x2d, wih_ref[...],
                   preferred_element_type=jnp.float32) + b_ref[...]
    gates_ref[...] = proj.reshape(T, B, G8)

    # ---- 2) Recurrence. Loop-invariant weights read once; fwd+bwd share a
    # single (bt, 2H) x (2H, 8H) matmul per step via the block-diagonal W_hh.
    whh = whh_ref[...]

    def step(t, carry):
        h_cat, c_f, c_b, mx_f, mx_b = carry
        tr = T - 1 - t
        rec = jnp.dot(h_cat.astype(mm_dtype), whh,
                      preferred_element_type=jnp.float32)           # (bt, 8H)
        # Slice the gates Ref: load only the 4H lanes each direction needs.
        g_f = gates_ref[t, :, :G] + rec[:, :G]                      # fwd @ step t
        g_b = gates_ref[tr, :, G:] + rec[:, G:]                     # bwd @ step T-1-t

        # PyTorch gate order: i, f, g, o. Elementwise math kept in f32.
        i_f = jax.nn.sigmoid(g_f[:, 0 * H:1 * H])
        f_f = jax.nn.sigmoid(g_f[:, 1 * H:2 * H])
        gg_f = jnp.tanh(g_f[:, 2 * H:3 * H])
        o_f = jax.nn.sigmoid(g_f[:, 3 * H:4 * H])
        c_f = f_f * c_f + i_f * gg_f
        h_f = o_f * jnp.tanh(c_f)

        i_b = jax.nn.sigmoid(g_b[:, 0 * H:1 * H])
        f_b = jax.nn.sigmoid(g_b[:, 1 * H:2 * H])
        gg_b = jnp.tanh(g_b[:, 2 * H:3 * H])
        o_b = jax.nn.sigmoid(g_b[:, 3 * H:4 * H])
        c_b = f_b * c_b + i_b * gg_b
        h_b = o_b * jnp.tanh(c_b)

        out_ref[t, :, :H] = h_f                                     # fwd half in place
        out_ref[tr, :, H:] = h_b                                    # bwd half in place
        mx_f = jnp.maximum(mx_f, h_f)                               # fused max-pool
        mx_b = jnp.maximum(mx_b, h_b)
        h_cat = jnp.concatenate([h_f, h_b], axis=-1)                # (bt, 2H)
        return (h_cat, c_f, c_b, mx_f, mx_b)

    zeros_h2 = jnp.zeros((B, 2 * H), jnp.float32)
    zeros_h = jnp.zeros((B, H), jnp.float32)
    ninf = jnp.full((B, H), -jnp.inf, jnp.float32)
    carry = lax.fori_loop(0, T, step, (zeros_h2, zeros_h, zeros_h, ninf, ninf),
                          unroll=unroll)
    _, _, _, mx_f, mx_b = carry

    # args.max_pool == True: hidden = max over time (accumulated in the loop).
    hid_ref[:, :H] = mx_f
    hid_ref[:, H:] = mx_b


# ----------------------------- wrapper helpers ------------------------------
def _vmem_budget_bytes():
    """Generation-aware VMEM budget: ~85% of physical (≈108 MiB v5e/v6e, ≈54 MiB v7x)."""
    cap = 64 * 1024 * 1024
    try:
        info = pltpu.get_tpu_info()
        cap = int(getattr(info, "vmem_capacity_bytes", cap))
    except Exception:
        pass
    return int(cap * 0.85)


def _tile_bytes(bt, T, E, H):
    f32 = 4
    return f32 * (2 * T * bt * E                       # x block (double-buffered)
                  + 2 * T * bt * 2 * H                 # output block (double-buffered)
                  + 2 * bt * 2 * H                     # hidden block
                  + T * bt * 8 * H                     # gates scratch
                  + 2 * (E * 8 * H + 8 * H + 2 * H * 8 * H))   # weights + bias


def _pick_bt(B_pad, T, E, H, budget):
    """Largest multiple-of-8 divisor of B_pad fitting the VMEM budget; once the
    batch is big enough keep >= 2 grid tiles so the batch axis can shard across
    TensorCores (v7x megacore)."""
    max_bt = B_pad if B_pad <= 8 else max(8, ((B_pad // 2) // 8) * 8)
    max_bt = min(max_bt, 128)
    for cand in range(max_bt, 7, -8):
        if B_pad % cand == 0 and _tile_bytes(cand, T, E, H) <= budget:
            return cand
    return 8


def encoder_forward(embedded, params, matmul_dtype=jnp.float32):
    """embedded: (T, B, E) float32. Returns (output (T,B,2H), hidden (B,2H))."""
    T, B, E = embedded.shape
    H = params["whh_f"].shape[0]

    # Parameter packing (glue, plain JAX): both directions' input weights /
    # biases concatenated; recurrent weights as one block-diagonal matrix.
    wih = jnp.concatenate([params["wih_f"], params["wih_b"]], axis=1)     # (E, 8H)
    bias = jnp.concatenate([params["b_f"], params["b_b"]], axis=1)        # (1, 8H)
    zer = jnp.zeros((H, 4 * H), jnp.float32)
    whh_blk = jnp.concatenate(
        [jnp.concatenate([params["whh_f"], zer], axis=1),
         jnp.concatenate([zer, params["whh_b"]], axis=1)], axis=0)        # (2H, 8H)
    # MXU operands may be bf16 (accumulation stays f32 via preferred_element_type).
    wih = wih.astype(matmul_dtype)
    whh_blk = whh_blk.astype(matmul_dtype)

    # Pad batch to a multiple of 8 sublanes so blocks tile cleanly.
    B_pad = ((B + 7) // 8) * 8
    x = embedded
    if B_pad != B:
        x = jnp.pad(embedded, ((0, 0), (0, B_pad - B), (0, 0)))

    budget = _vmem_budget_bytes()
    bt = _pick_bt(B_pad, T, E, H, budget)
    grid = (B_pad // bt,)

    # Full unroll for short sequences, modest unroll factor for long ones.
    unroll = True if T <= 32 else 8
    kernel = functools.partial(bidir_lstm_kernel, unroll=unroll)

    vmem_limit = int(min(max(int(_tile_bytes(bt, T, E, H) * 1.5),
                             32 * 1024 * 1024), budget))

    out_shapes = (jax.ShapeDtypeStruct((T, B_pad, 2 * H), jnp.float32),
                  jax.ShapeDtypeStruct((B_pad, 2 * H), jnp.float32))

    output, hidden = pl.pallas_call(
        kernel,
        out_shape=out_shapes,
        grid_spec=pltpu.PrefetchScalarGridSpec(
            num_scalar_prefetch=0,
            grid=grid,
            in_specs=[
                pl.BlockSpec((T, bt, E), lambda i: (0, i, 0)),        # x, batch-tiled
                pl.BlockSpec((E, 8 * H), lambda i: (0, 0)),           # W_ih fwd|bwd
                pl.BlockSpec((1, 8 * H), lambda i: (0, 0)),           # bias fwd|bwd
                pl.BlockSpec((2 * H, 8 * H), lambda i: (0, 0)),       # block-diag W_hh
            ],
            out_specs=(
                pl.BlockSpec((T, bt, 2 * H), lambda i: (0, i, 0)),    # output
                pl.BlockSpec((bt, 2 * H), lambda i: (i, 0)),          # hidden (max-pool)
            ),
            scratch_shapes=[pltpu.VMEM((T, bt, 8 * H), jnp.float32)], # pre-projected gates
        ),
        compiler_params=pltpu.CompilerParams(
            dimension_semantics=("parallel",),
            vmem_limit_bytes=vmem_limit),
    )(x, wih, bias, whh_blk)

    if B_pad != B:
        output = output[:, :B]
        hidden = hidden[:B]
    return output, hidden


# ----------------------------- reference (plain JAX) ------------------------
def _ref_lstm_dir(x, wih, whh, b, reverse=False):
    T, B, E = x.shape
    H = whh.shape[0]
    xs = x[::-1] if reverse else x

    def step(carry, x_t):
        h, c = carry
        g = (jnp.dot(x_t, wih, precision=lax.Precision.HIGHEST)
             + jnp.dot(h, whh, precision=lax.Precision.HIGHEST) + b)
        i = jax.nn.sigmoid(g[:, :H])
        f = jax.nn.sigmoid(g[:, H:2 * H])
        gg = jnp.tanh(g[:, 2 * H:3 * H])
        o = jax.nn.sigmoid(g[:, 3 * H:])
        c = f * c + i * gg
        h = o * jnp.tanh(c)
        return (h, c), h

    init = (jnp.zeros((B, H), jnp.float32), jnp.zeros((B, H), jnp.float32))
    _, hs = lax.scan(step, init, xs)
    return hs[::-1] if reverse else hs


def encoder_forward_ref(embedded, params):
    fwd = _ref_lstm_dir(embedded, params["wih_f"], params["whh_f"], params["b_f"], reverse=False)
    bwd = _ref_lstm_dir(embedded, params["wih_b"], params["whh_b"], params["b_b"], reverse=True)
    out = jnp.concatenate([fwd, bwd], axis=-1)
    hidden = jnp.max(out, axis=0)
    return out, hidden


# ----------------------------------- main ------------------------------------
if __name__ == "__main__":
    # small shapes consistent with the module
    T, B = 8, 2           # seq len, batch
    vocab = 50
    E = 32                # emb_dim (module default 100, scaled down)
    H = 32                # hidden_size (module default 256, scaled down)

    key = jax.random.PRNGKey(0)
    keys = jax.random.split(key, 9)
    k = 1.0 / jnp.sqrt(jnp.float32(H))

    # deterministic parameter init (PyTorch-style uniform(-1/sqrt(H), 1/sqrt(H)))
    embed_table = jax.random.normal(keys[0], (vocab, E), jnp.float32) * 0.1
    params = {
        "wih_f": jax.random.uniform(keys[1], (E, 4 * H), jnp.float32, -k, k),
        "whh_f": jax.random.uniform(keys[2], (H, 4 * H), jnp.float32, -k, k),
        "b_f":   jax.random.uniform(keys[3], (1, 4 * H), jnp.float32, -k, k),  # b_ih + b_hh folded
        "wih_b": jax.random.uniform(keys[4], (E, 4 * H), jnp.float32, -k, k),
        "whh_b": jax.random.uniform(keys[5], (H, 4 * H), jnp.float32, -k, k),
        "b_b":   jax.random.uniform(keys[6], (1, 4 * H), jnp.float32, -k, k),
    }

    # token ids (T, B) and embedding lookup (glue, plain JAX gather)
    inputs = jax.random.randint(keys[7], (T, B), 0, vocab, dtype=jnp.int32)
    embedded = embed_table[inputs]            # (T, B, E)

    # TODO(synk): the z_mask / pack_padded_sequence variable-length path has no
    # clean Pallas equivalent here; only the lengths=None / z_mask=None forward path is implemented.

    out_ref, hid_ref = encoder_forward_ref(embedded, params)

    # f32 MXU operands: strict check against the HIGHEST-precision reference.
    output, hidden = encoder_forward(embedded, params, matmul_dtype=jnp.float32)
    output = jax.block_until_ready(output)
    hidden = jax.block_until_ready(hidden)
    assert output.shape == (T, B, 2 * H) and hidden.shape == (B, 2 * H)
    assert jnp.allclose(output, out_ref, rtol=1e-4, atol=1e-4), "output mismatch (f32)"
    assert jnp.allclose(hidden, hid_ref, rtol=1e-4, atol=1e-4), "hidden mismatch (f32)"

    # bf16 MXU operands (f32 accumulation, f32 elementwise): looser tolerance.
    output_bf, hidden_bf = encoder_forward(embedded, params, matmul_dtype=jnp.bfloat16)
    output_bf = jax.block_until_ready(output_bf)
    hidden_bf = jax.block_until_ready(hidden_bf)
    assert jnp.allclose(output_bf, out_ref, rtol=5e-2, atol=5e-2), "output mismatch (bf16)"
    assert jnp.allclose(hidden_bf, hid_ref, rtol=5e-2, atol=5e-2), "hidden mismatch (bf16)"

    print("KERNEL_OK")
</pallas_src>

<mosaic_0001>
module attributes {stable_mosaic.version = 11 : i64} {
  func.func @bidir_lstm_kernel(%arg0: i32, %arg1: memref<8x8x32xf32, #tpu.memory_space<vmem>>, %arg2: memref<32x256xf32, #tpu.memory_space<vmem>>, %arg3: memref<1x256xf32, #tpu.memory_space<vmem>>, %arg4: memref<64x256xf32, #tpu.memory_space<vmem>>, %arg5: memref<8x8x64xf32, #tpu.memory_space<vmem>>, %arg6: memref<8x64xf32, #tpu.memory_space<vmem>>, %arg7: memref<8x8x256xf32, #tpu.memory_space<vmem>>) attributes {dimension_semantics = [#tpu.dimension_semantics<parallel>], iteration_bounds = array<i64: 1>, scalar_prefetch = 0 : i64, scratch_operands = 1 : i64, tpu.core_type = #tpu.core_type<tc>, window_params = [{transform_indices = @transform_0, window_bounds = array<i64: 8, 8, 32>}, {pipeline_mode = #tpu.pipeline_mode<synchronous>, transform_indices = @transform_1, window_bounds = array<i64: 32, 256>}, {pipeline_mode = #tpu.pipeline_mode<synchronous>, transform_indices = @transform_2, window_bounds = array<i64: 1, 256>}, {pipeline_mode = #tpu.pipeline_mode<synchronous>, transform_indices = @transform_3, window_bounds = array<i64: 64, 256>}, {transform_indices = @transform_4, window_bounds = array<i64: 8, 8, 64>}, {transform_indices = @transform_5, window_bounds = array<i64: 8, 64>}]} {
    %c0 = arith.constant 0 : index
    %c0_0 = arith.constant 0 : index
    %c0_1 = arith.constant 0 : index
    %0 = vector.load %arg1[%c0, %c0_0, %c0_1] : memref<8x8x32xf32, #tpu.memory_space<vmem>>, vector<8x8x32xf32>
    %1 = vector.shape_cast %0 : vector<8x8x32xf32> to vector<64x32xf32>
    %c0_2 = arith.constant 0 : index
    %c0_3 = arith.constant 0 : index
    %2 = vector.load %arg2[%c0_2, %c0_3] : memref<32x256xf32, #tpu.memory_space<vmem>>, vector<32x256xf32>
    %cst = arith.constant dense<0.000000e+00> : vector<64x256xf32>
    %3 = tpu.matmul %1, %2, %cst {dimension_numbers = #tpu.dot_dimension_numbers<[1], [0], [0], [1], [0, 0, 1, 1], [], []>} : vector<64x32xf32>, vector<32x256xf32>, vector<64x256xf32> -> vector<64x256xf32>
    %c0_4 = arith.constant 0 : index
    %c0_5 = arith.constant 0 : index
    %4 = vector.load %arg3[%c0_4, %c0_5] : memref<1x256xf32, #tpu.memory_space<vmem>>, vector<1x256xf32>
    %5 = vector.broadcast %4 : vector<1x256xf32> to vector<64x256xf32>
    %6 = arith.addf %3, %5 : vector<64x256xf32>
    %7 = vector.shape_cast %6 : vector<64x256xf32> to vector<8x8x256xf32>
    %c0_6 = arith.constant 0 : index
    %c0_7 = arith.constant 0 : index
    %c0_8 = arith.constant 0 : index
    %8 = vector.load %arg7[%c0_6, %c0_7, %c0_8] : memref<8x8x256xf32, #tpu.memory_space<vmem>>, vector<8x8x256xf32>
    tpu.vector_store %arg7[%c0_6, %c0_7, %c0_8], %7 {strides = array<i32>} : memref<8x8x256xf32, #tpu.memory_space<vmem>>, vector<8x8x256xf32>,
    %c0_9 = arith.constant 0 : index
    %c0_10 = arith.constant 0 : index
    %9 = vector.load %arg4[%c0_9, %c0_10] : memref<64x256xf32, #tpu.memory_space<vmem>>, vector<64x256xf32>
    %cst_11 = arith.constant 0.000000e+00 : f32
    %10 = vector.broadcast %cst_11 : f32 to vector<8x64xf32>
    %cst_12 = arith.constant 0.000000e+00 : f32
    %11 = vector.broadcast %cst_12 : f32 to vector<8x32xf32>
    %cst_13 = arith.constant 0xFF800000 : f32
    %12 = vector.broadcast %cst_13 : f32 to vector<8x32xf32>
    %c0_i32 = arith.constant 0 : i32
    %c7_i32 = arith.constant 7 : i32
    %13 = arith.subi %c7_i32, %c0_i32 : i32
    %cst_14 = arith.constant dense<0.000000e+00> : vector<8x256xf32>
    %14 = tpu.matmul %10, %9, %cst_14 {dimension_numbers = #tpu.dot_dimension_numbers<[1], [0], [0], [1], [0, 0, 1, 1], [], []>} : vector<8x64xf32>, vector<64x256xf32>, vector<8x256xf32> -> vector<8x256xf32>
    %15 = arith.index_cast %c0_i32 : i32 to index
    %c0_15 = arith.constant 0 : index
    %c0_16 = arith.constant 0 : index
    %16 = vector.load %arg7[%15, %c0_15, %c0_16] : memref<8x8x256xf32, #tpu.memory_space<vmem>>, vector<1x8x128xf32>
    %17 = vector.shape_cast %16 : vector<1x8x128xf32> to vector<8x128xf32>
    %18 = vector.extract_strided_slice %14 {offsets = [0, 0], sizes = [8, 128], strides = [1, 1]} : vector<8x256xf32> to vector<8x128xf32>
    %19 = arith.addf %17, %18 : vector<8x128xf32>
    %20 = arith.index_cast %13 : i32 to index
    %c0_17 = arith.constant 0 : index
    %c128 = arith.constant 128 : index
    %21 = vector.load %arg7[%20, %c0_17, %c128] : memref<8x8x256xf32, #tpu.memory_space<vmem>>, vector<1x8x128xf32>
    %22 = vector.shape_cast %21 : vector<1x8x128xf32> to vector<8x128xf32>
    %23 = vector.extract_strided_slice %14 {offsets = [0, 128], sizes = [8, 128], strides = [1, 1]} : vector<8x256xf32> to vector<8x128xf32>
    %24 = arith.addf %22, %23 : vector<8x128xf32>
    %25 = vector.extract_strided_slice %19 {offsets = [0, 0], sizes = [8, 32], strides = [1, 1]} : vector<8x128xf32> to vector<8x32xf32>
    %26 = arith.negf %25 : vector<8x32xf32>
    %27 = math.exp %26 : vector<8x32xf32>
    %cst_18 = arith.constant 1.000000e+00 : f32
    %28 = vector.broadcast %cst_18 : f32 to vector<8x32xf32>
    %29 = arith.addf %28, %27 : vector<8x32xf32>
    %30 = arith.divf %28, %29 : vector<8x32xf32>
    %31 = vector.extract_strided_slice %19 {offsets = [0, 32], sizes = [8, 32], strides = [1, 1]} : vector<8x128xf32> to vector<8x32xf32>
    %32 = arith.negf %31 : vector<8x32xf32>
    %33 = math.exp %32 : vector<8x32xf32>
    %cst_19 = arith.constant 1.000000e+00 : f32
    %34 = vector.broadcast %cst_19 : f32 to vector<8x32xf32>
    %35 = arith.addf %34, %33 : vector<8x32xf32>
    %36 = arith.divf %34, %35 : vector<8x32xf32>
    %37 = vector.extract_strided_slice %19 {offsets = [0, 64], sizes = [8, 32], strides = [1, 1]} : vector<8x128xf32> to vector<8x32xf32>
    %38 = math.tanh %37 : vector<8x32xf32>
    %39 = vector.extract_strided_slice %19 {offsets = [0, 96], sizes = [8, 32], strides = [1, 1]} : vector<8x128xf32> to vector<8x32xf32>
    %40 = arith.negf %39 : vector<8x32xf32>
    %41 = math.exp %40 : vector<8x32xf32>
    %cst_20 = arith.constant 1.000000e+00 : f32
    %42 = vector.broadcast %cst_20 : f32 to vector<8x32xf32>
    %43 = arith.addf %42, %41 : vector<8x32xf32>
    %44 = arith.divf %42, %43 : vector<8x32xf32>
    %45 = arith.mulf %36, %11 : vector<8x32xf32>
    %46 = arith.mulf %30, %38 : vector<8x32xf32>
    %47 = arith.addf %45, %46 : vector<8x32xf32>
    %48 = math.tanh %47 : vector<8x32xf32>
    %49 = arith.mulf %44, %48 : vector<8x32xf32>
    %50 = vector.extract_strided_slice %24 {offsets = [0, 0], sizes = [8, 32], strides = [1, 1]} : vector<8x128xf32> to vector<8x32xf32>
    %51 = arith.negf %50 : vector<8x32xf32>
    %52 = math.exp %51 : vector<8x32xf32>
    %cst_21 = arith.constant 1.000000e+00 : f32
    %53 = vector.broadcast %cst_21 : f32 to vector<8x32xf32>
    %54 = arith.addf %53, %52 : vector<8x32xf32>
    %55 = arith.divf %53, %54 : vector<8x32xf32>
    %56 = vector.extract_strided_slice %24 {offsets = [0, 32], sizes = [8, 32], strides = [1, 1]} : vector<8x128xf32> to vector<8x32xf32>
    %57 = arith.negf %56 : vector<8x32xf32>
    %58 = math.exp %57 : vector<8x32xf32>
    %cst_22 = arith.constant 1.000000e+00 : f32
    %59 = vector.broadcast %cst_22 : f32 to vector<8x32xf32>
    %60 = arith.addf %59, %58 : vector<8x32xf32>
    %61 = arith.divf %59, %60 : vector<8x32xf32>
    %62 = vector.extract_strided_slice %24 {offsets = [0, 64], sizes = [8, 32], strides = [1, 1]} : vector<8x128xf32> to vector<8x32xf32>
    %63 = math.tanh %62 : vector<8x32xf32>
    %64 = vector.extract_strided_slice %24 {offsets = [0, 96], sizes = [8, 32], strides = [1, 1]} : vector<8x128xf32> to vector<8x32xf32>
    %65 = arith.negf %64 : vector<8x32xf32>
    %66 = math.exp %65 : vector<8x32xf32>
    %cst_23 = arith.constant 1.000000e+00 : f32
    %67 = vector.broadcast %cst_23 : f32 to vector<8x32xf32>
    %68 = arith.addf %67, %66 : vector<8x32xf32>
    %69 = arith.divf %67, %68 : vector<8x32xf32>
    %70 = arith.mulf %61, %11 : vector<8x32xf32>
    %71 = arith.mulf %55, %63 : vector<8x32xf32>
    %72 = arith.addf %70, %71 : vector<8x32xf32>
    %73 = math.tanh %72 : vector<8x32xf32>
    %74 = arith.mulf %69, %73 : vector<8x32xf32>
    %75 = arith.index_cast %c0_i32 : i32 to index
    %c0_24 = arith.constant 0 : index
    %c0_25 = arith.constant 0 : index
    %76 = vector.load %arg5[%75, %c0_24, %c0_25] : memref<8x8x64xf32, #tpu.memory_space<vmem>>, vector<1x8x32xf32>
    %77 = vector.shape_cast %76 : vector<1x8x32xf32> to vector<8x32xf32>
    %78 = vector.shape_cast %49 : vector<8x32xf32> to vector<1x8x32xf32>
    tpu.vector_store %arg5[%75, %c0_24, %c0_25], %78 {strides = array<i32>} : memref<8x8x64xf32, #tpu.memory_space<vmem>>, vector<1x8x32xf32>,
    %79 = arith.index_cast %13 : i32 to index
    %c0_26 = arith.constant 0 : index
    %c32 = arith.constant 32 : index
    %80 = vector.load %arg5[%79, %c0_26, %c32] : memref<8x8x64xf32, #tpu.memory_space<vmem>>, vector<1x8x32xf32>
    %81 = vector.shape_cast %80 : vector<1x8x32xf32> to vector<8x32xf32>
    %82 = vector.shape_cast %74 : vector<8x32xf32> to vector<1x8x32xf32>
    tpu.vector_store %arg5[%79, %c0_26, %c32], %82 {strides = array<i32>} : memref<8x8x64xf32, #tpu.memory_space<vmem>>, vector<1x8x32xf32>,
    %83 = arith.maximumf %12, %49 : vector<8x32xf32>
    %84 = arith.maximumf %12, %74 : vector<8x32xf32>
    %85 = tpu.concatenate %49, %74 in 1 : vector<8x32xf32>, vector<8x32xf32> -> vector<8x64xf32>
    %c1_i32 = arith.constant 1 : i32
    %c7_i32_27 = arith.constant 7 : i32
    %86 = arith.subi %c7_i32_27, %c1_i32 : i32
    %cst_28 = arith.constant dense<0.000000e+00> : vector<8x256xf32>
    %87 = tpu.matmul %85, %9, %cst_28 {dimension_numbers = #tpu.dot_dimension_numbers<[1], [0], [0], [1], [0, 0, 1, 1], [], []>} : vector<8x64xf32>, vector<64x256xf32>, vector<8x256xf32> -> vector<8x256xf32>
    %88 = arith.index_cast %c1_i32 : i32 to index
    %c0_29 = arith.constant 0 : index
    %c0_30 = arith.constant 0 : index
    %89 = vector.load %arg7[%88, %c0_29, %c0_30] : memref<8x8x256xf32, #tpu.memory_space<vmem>>, vector<1x8x128xf32>
    %90 = vector.shape_cast %89 : vector<1x8x128xf32> to vector<8x128xf32>
    %91 = vector.extract_strided_slice %87 {offsets = [0, 0], sizes = [8, 128], strides = [1, 1]} : vector<8x256xf32> to vector<8x128xf32>
    %92 = arith.addf %90, %91 : vector<8x128xf32>
    %93 = arith.index_cast %86 : i32 to index
    %c0_31 = arith.constant 0 : index
    %c128_32 = arith.constant 128 : index
    %94 = vector.load %arg7[%93, %c0_31, %c128_32] : memref<8x8x256xf32, #tpu.memory_space<vmem>>, vector<1x8x128xf32>
    %95 = vector.shape_cast %94 : vector<1x8x128xf32> to vector<8x128xf32>
    %96 = vector.extract_strided_slice %87 {offsets = [0, 128], sizes = [8, 128], strides = [1, 1]} : vector<8x256xf32> to vector<8x128xf32>
    %97 = arith.addf %95, %96 : vector<8x128xf32>
    %98 = vector.extract_strided_slice %92 {offsets = [0, 0], sizes = [8, 32], strides = [1, 1]} : vector<8x128xf32> to vector<8x32xf32>
    %99 = arith.negf %98 : vector<8x32xf32>
    %100 = math.exp %99 : vector<8x32xf32>
    %cst_33 = arith.constant 1.000000e+00 : f32
    %101 = vector.broadcast %cst_33 : f32 to vector<8x32xf32>
    %102 = arith.addf %101, %100 : vector<8x32xf32>
    %103 = arith.divf %101, %102 : vector<8x32xf32>
    %104 = vector.extract_strided_slice %92 {offsets = [0, 32], sizes = [8, 32], strides = [1, 1]} : vector<8x128xf32> to vector<8x32xf32>
    %105 = arith.negf %104 : vector<8x32xf32>
    %106 = math.exp %105 : vector<8x32xf32>
    %cst_34 = arith.constant 1.000000e+00 : f32
    %107 = vector.broadcast %cst_34 : f32 to vector<8x32xf32>
    %108 = arith.addf %107, %106 : vector<8x32xf32>
    %109 = arith.divf %107, %108 : vector<8x32xf32>
    %110 = vector.extract_strided_slice %92 {offsets = [0, 64], sizes = [8, 32], strides = [1, 1]} : vector<8x128xf32> to vector<8x32xf32>
    %111 = math.tanh %110 : vector<8x32xf32>
    %112 = vector.extract_strided_slice %92 {offsets = [0, 96], sizes = [8, 32], strides = [1, 1]} : vector<8x128xf32> to vector<8x32xf32>
    %113 = arith.negf %112 : vector<8x32xf32>
    %114 = math.exp %113 : vector<8x32xf32>
    %cst_35 = arith.constant 1.000000e+00 : f32
    %115 = vector.broadcast %cst_35 : f32 to vector<8x32xf32>
    %116 = arith.addf %115, %114 : vector<8x32xf32>
    %117 = arith.divf %115, %116 : vector<8x32xf32>
    %118 = arith.mulf %109, %47 : vector<8x32xf32>
    %119 = arith.mulf %103, %111 : vector<8x32xf32>
    %120 = arith.addf %118, %119 : vector<8x32xf32>
    %121 = math.tanh %120 : vector<8x32xf32>
    %122 = arith.mulf %117, %121 : vector<8x32xf32>
    %123 = vector.extract_strided_slice %97 {offsets = [0, 0], sizes = [8, 32], strides = [1, 1]} : vector<8x128xf32> to vector<8x32xf32>
    %124 = arith.negf %123 : vector<8x32xf32>
    %125 = math.exp %124 : vector<8x32xf32>
    %cst_36 = arith.constant 1.000000e+00 : f32
    %126 = vector.broadcast %cst_36 : f32 to vector<8x32xf32>
    %127 = arith.addf %126, %125 : vector<8x32xf32>
    %128 = arith.divf %126, %127 : vector<8x32xf32>
    %129 = vector.extract_strided_slice %97 {offsets = [0, 32], sizes = [8, 32], strides = [1, 1]} : vector<8x128xf32> to vector<8x32xf32>
    %130 = arith.negf %129 : vector<8x32xf32>
    %131 = math.exp %130 : vector<8x32xf32>
    %cst_37 = arith.constant 1.000000e+00 : f32
    %132 = vector.broadcast %cst_37 : f32 to vector<8x32xf32>
    %133 = arith.addf %132, %131 : vector<8x32xf32>
    %134 = arith.divf %132, %133 : vector<8x32xf32>
    %135 = vector.extract_strided_slice %97 {offsets = [0, 64], sizes = [8, 32], strides = [1, 1]} : vector<8x128xf32> to vector<8x32xf32>
    %136 = math.tanh %135 : vector<8x32xf32>
    %137 = vector.extract_strided_slice %97 {offsets = [0, 96], sizes = [8, 32], strides = [1, 1]} : vector<8x128xf32> to vector<8x32xf32>
    %138 = arith.negf %137 : vector<8x32xf32>
    %139 = math.exp %138 : vector<8x32xf32>
    %cst_38 = arith.constant 1.000000e+00 : f32
    %140 = vector.broadcast %cst_38 : f32 to vector<8x32xf32>
    %141 = arith.addf %140, %139 : vector<8x32xf32>
    %142 = arith.divf %140, %141 : vector<8x32xf32>
    %143 = arith.mulf %134, %72 : vector<8x32xf32>
    %144 = arith.mulf %128, %136 : vector<8x32xf32>
    %145 = arith.addf %143, %144 : vector<8x32xf32>
    %146 = math.tanh %145 : vector<8x32xf32>
    %147 = arith.mulf %142, %146 : vector<8x32xf32>
    %148 = arith.index_cast %c1_i32 : i32 to index
    %c0_39 = arith.constant 0 : index
    %c0_40 = arith.constant 0 : index
    %149 = vector.load %arg5[%148, %c0_39, %c0_40] : memref<8x8x64xf32, #tpu.memory_space<vmem>>, vector<1x8x32xf32>
    %150 = vector.shape_cast %149 : vector<1x8x32xf32> to vector<8x32xf32>
    %151 = vector.shape_cast %122 : vector<8x32xf32> to vector<1x8x32xf32>
    tpu.vector_store %arg5[%148, %c0_39, %c0_40], %151 {strides = array<i32>} : memref<8x8x64xf32, #tpu.memory_space<vmem>>, vector<1x8x32xf32>,
    %152 = arith.index_cast %86 : i32 to index
    %c0_41 = arith.constant 0 : index
    %c32_42 = arith.constant 32 : index
    %153 = vector.load %arg5[%152, %c0_41, %c32_42] : memref<8x8x64xf32, #tpu.memory_space<vmem>>, vector<1x8x32xf32>
    %154 = vector.shape_cast %153 : vector<1x8x32xf32> to vector<8x32xf32>
    %155 = vector.shape_cast %147 : vector<8x32xf32> to vector<1x8x32xf32>
    tpu.vector_store %arg5[%152, %c0_41, %c32_42], %155 {strides = array<i32>} : memref<8x8x64xf32, #tpu.memory_space<vmem>>, vector<1x8x32xf32>,
    %156 = arith.maximumf %83, %122 : vector<8x32xf32>
    %157 = arith.maximumf %84, %147 : vector<8x32xf32>
    %158 = tpu.concatenate %122, %147 in 1 : vector<8x32xf32>, vector<8x32xf32> -> vector<8x64xf32>
    %c2_i32 = arith.constant 2 : i32
    %c7_i32_43 = arith.constant 7 : i32
    %159 = arith.subi %c7_i32_43, %c2_i32 : i32
    %cst_44 = arith.constant dense<0.000000e+00> : vector<8x256xf32>
    %160 = tpu.matmul %158, %9, %cst_44 {dimension_numbers = #tpu.dot_dimension_numbers<[1], [0], [0], [1], [0, 0, 1, 1], [], []>} : vector<8x64xf32>, vector<64x256xf32>, vector<8x256xf32> -> vector<8x256xf32>
    %161 = arith.index_cast %c2_i32 : i32 to index
    %c0_45 = arith.constant 0 : index
    %c0_46 = arith.constant 0 : index
    %162 = vector.load %arg7[%161, %c0_45, %c0_46] : memref<8x8x256xf32, #tpu.memory_space<vmem>>, vector<1x8x128xf32>
    %163 = vector.shape_cast %162 : vector<1x8x128xf32> to vector<8x128xf32>
    %164 = vector.extract_strided_slice %160 {offsets = [0, 0], sizes = [8, 128], strides = [1, 1]} : vector<8x256xf32> to vector<8x128xf32>
    %165 = arith.addf %163, %164 : vector<8x128xf32>
    %166 = arith.index_cast %159 : i32 to index
    %c0_47 = arith.constant 0 : index
    %c128_48 = arith.constant 128 : index
    %167 = vector.load %arg7[%166, %c0_47, %c128_48] : memref<8x8x256xf32, #tpu.memory_space<vmem>>, vector<1x8x128xf32>
    %168 = vector.shape_cast %167 : vector<1x8x128xf32> to vector<8x128xf32>
    %169 = vector.extract_strided_slice %160 {offsets = [0, 128], sizes = [8, 128], strides = [1, 1]} : vector<8x256xf32> to vector<8x128xf32>
    %170 = arith.addf %168, %169 : vector<8x128xf32>
    %171 = vector.extract_strided_slice %165 {offsets = [0, 0], sizes = [8, 32], strides = [1, 1]} : vector<8x128xf32> to vector<8x32xf32>
    %172 = arith.negf %171 : vector<8x32xf32>
    %173 = math.exp %172 : vector<8x32xf32>
    %cst_49 = arith.constant 1.000000e+00 : f32
    %174 = vector.broadcast %cst_49 : f32 to vector<8x32xf32>
    %175 = arith.addf %174, %173 : vector<8x32xf32>
    %176 = arith.divf %174, %175 : vector<8x32xf32>
    %177 = vector.extract_strided_slice %165 {offsets = [0, 32], sizes = [8, 32], strides = [1, 1]} : vector<8x128xf32> to vector<8x32xf32>
    %178 = arith.negf %177 : vector<8x32xf32>
    %179 = math.exp %178 : vector<8x32xf32>
    %cst_50 = arith.constant 1.000000e+00 : f32
    %180 = vector.broadcast %cst_50 : f32 to vector<8x32xf32>
    %181 = arith.addf %180, %179 : vector<8x32xf32>
    %182 = arith.divf %180, %181 : vector<8x32xf32>
    %183 = vector.extract_strided_slice %165 {offsets = [0, 64], sizes = [8, 32], strides = [1, 1]} : vector<8x128xf32> to vector<8x32xf32>
    %184 = math.tanh %183 : vector<8x32xf32>
    %185 = vector.extract_strided_slice %165 {offsets = [0, 96], sizes = [8, 32], strides = [1, 1]} : vector<8x128xf32> to vector<8x32xf32>
    %186 = arith.negf %185 : vector<8x32xf32>
    %187 = math.exp %186 : vector<8x32xf32>
    %cst_51 = arith.constant 1.000000e+00 : f32
    %188 = vector.broadcast %cst_51 : f32 to vector<8x32xf32>
    %189 = arith.addf %188, %187 : vector<8x32xf32>
    %190 = arith.divf %188, %189 : vector<8x32xf32>
    %191 = arith.mulf %182, %120 : vector<8x32xf32>
    %192 = arith.mulf %176, %184 : vector<8x32xf32>
    %193 = arith.addf %191, %192 : vector<8x32xf32>
    %194 = math.tanh %193 : vector<8x32xf32>
    %195 = arith.mulf %190, %194 : vector<8x32xf32>
    %196 = vector.extract_strided_slice %170 {offsets = [0, 0], sizes = [8, 32], strides = [1, 1]} : vector<8x128xf32> to vector<8x32xf32>
    %197 = arith.negf %196 : vector<8x32xf32>
    %198 = math.exp %197 : vector<8x32xf32>
    %cst_52 = arith.constant 1.000000e+00 : f32
    %199 = vector.broadcast %cst_52 : f32 to vector<8x32xf32>
    %200 = arith.addf %199, %198 : vector<8x32xf32>
    %201 = arith.divf %199, %200 : vector<8x32xf32>
    %202 = vector.extract_strided_slice %170 {offsets = [0, 32], sizes = [8, 32], strides = [1, 1]} : vector<8x128xf32> to vector<8x32xf32>
    %203 = arith.negf %202 : vector<8x32xf32>
    %204 = math.exp %203 : vector<8x32xf32>
    %cst_53 = arith.constant 1.000000e+00 : f32
    %205 = vector.broadcast %cst_53 : f32 to vector<8x32xf32>
    %206 = arith.addf %205, %204 : vector<8x32xf32>
    %207 = arith.divf %205, %206 : vector<8x32xf32>
    %208 = vector.extract_strided_slice %170 {offsets = [0, 64], sizes = [8, 32], strides = [1, 1]} : vector<8x128xf32> to vector<8x32xf32>
    %209 = math.tanh %208 : vector<8x32xf32>
    %210 = vector.extract_strided_slice %170 {offsets = [0, 96], sizes = [8, 32], strides = [1, 1]} : vector<8x128xf32> to vector<8x32xf32>
    %211 = arith.negf %210 : vector<8x32xf32>
    %212 = math.exp %211 : vector<8x32xf32>
    %cst_54 = arith.constant 1.000000e+00 : f32
    %213 = vector.broadcast %cst_54 : f32 to vector<8x32xf32>
    %214 = arith.addf %213, %212 : vector<8x32xf32>
    %215 = arith.divf %213, %214 : vector<8x32xf32>
    %216 = arith.mulf %207, %145 : vector<8x32xf32>
    %217 = arith.mulf %201, %209 : vector<8x32xf32>
    %218 = arith.addf %216, %217 : vector<8x32xf32>
    %219 = math.tanh %218 : vector<8x32xf32>
    %220 = arith.mulf %215, %219 : vector<8x32xf32>
    %221 = arith.index_cast %c2_i32 : i32 to index
    %c0_55 = arith.constant 0 : index
    %c0_56 = arith.constant 0 : index
    %222 = vector.load %arg5[%221, %c0_55, %c0_56] : memref<8x8x64xf32, #tpu.memory_space<vmem>>, vector<1x8x32xf32>
    %223 = vector.shape_cast %222 : vector<1x8x32xf32> to vector<8x32xf32>
    %224 = vector.shape_cast %195 : vector<8x32xf32> to vector<1x8x32xf32>
    tpu.vector_store %arg5[%221, %c0_55, %c0_56], %224 {strides = array<i32>} : memref<8x8x64xf32, #tpu.memory_space<vmem>>, vector<1x8x32xf32>,
    %225 = arith.index_cast %159 : i32 to index
    %c0_57 = arith.constant 0 : index
    %c32_58 = arith.constant 32 : index
    %226 = vector.load %arg5[%225, %c0_57, %c32_58] : memref<8x8x64xf32, #tpu.memory_space<vmem>>, vector<1x8x32xf32>
    %227 = vector.shape_cast %226 : vector<1x8x32xf32> to vector<8x32xf32>
    %228 = vector.shape_cast %220 : vector<8x32xf32> to vector<1x8x32xf32>
    tpu.vector_store %arg5[%225, %c0_57, %c32_58], %228 {strides = array<i32>} : memref<8x8x64xf32, #tpu.memory_space<vmem>>, vector<1x8x32xf32>,
    %229 = arith.maximumf %156, %195 : vector<8x32xf32>
    %230 = arith.maximumf %157, %220 : vector<8x32xf32>
    %231 = tpu.concatenate %195, %220 in 1 : vector<8x32xf32>, vector<8x32xf32> -> vector<8x64xf32>
    %c3_i32 = arith.constant 3 : i32
    %c7_i32_59 = arith.constant 7 : i32
    %232 = arith.subi %c7_i32_59, %c3_i32 : i32
    %cst_60 = arith.constant dense<0.000000e+00> : vector<8x256xf32>
    %233 = tpu.matmul %231, %9, %cst_60 {dimension_numbers = #tpu.dot_dimension_numbers<[1], [0], [0], [1], [0, 0, 1, 1], [], []>} : vector<8x64xf32>, vector<64x256xf32>, vector<8x256xf32> -> vector<8x256xf32>
    %234 = arith.index_cast %c3_i32 : i32 to index
    %c0_61 = arith.constant 0 : index
    %c0_62 = arith.constant 0 : index
    %235 = vector.load %arg7[%234, %c0_61, %c0_62] : memref<8x8x256xf32, #tpu.memory_space<vmem>>, vector<1x8x128xf32>
    %236 = vector.shape_cast %235 : vector<1x8x128xf32> to vector<8x128xf32>
    %237 = vector.extract_strided_slice %233 {offsets = [0, 0], sizes = [8, 128], strides = [1, 1]} : vector<8x256xf32> to vector<8x128xf32>
    %238 = arith.addf %236, %237 : vector<8x128xf32>
    %239 = arith.index_cast %232 : i32 to index
    %c0_63 = arith.constant 0 : index
    %c128_64 = arith.constant 128 : index
    %240 = vector.load %arg7[%239, %c0_63, %c128_64] : memref<8x8x256xf32, #tpu.memory_space<vmem>>, vector<1x8x128xf32>
    %241 = vector.shape_cast %240 : vector<1x8x128xf32> to vector<8x128xf32>
    %242 = vector.extract_strided_slice %233 {offsets = [0, 128], sizes = [8, 128], strides = [1, 1]} : vector<8x256xf32> to vector<8x128xf32>
    %243 = arith.addf %241, %242 : vector<8x128xf32>
    %244 = vector.extract_strided_slice %238 {offsets = [0, 0], sizes = [8, 32], strides = [1, 1]} : vector<8x128xf32> to vector<8x32xf32>
    %245 = arith.negf %244 : vector<8x32xf32>
    %246 = math.exp %245 : vector<8x32xf32>
    %cst_65 = arith.constant 1.000000e+00 : f32
    %247 = vector.broadcast %cst_65 : f32 to vector<8x32xf32>
    %248 = arith.addf %247, %246 : vector<8x32xf32>
    %249 = arith.divf %247, %248 : vector<8x32xf32>
    %250 = vector.extract_strided_slice %238 {offsets = [0, 32], sizes = [8, 32], strides = [1, 1]} : vector<8x128xf32> to vector<8x32xf32>
    %251 = arith.negf %250 : vector<8x32xf32>
    %252 = math.exp %251 : vector<8x32xf32>
    %cst_66 = arith.constant 1.000000e+00 : f32
    %253 = vector.broadcast %cst_66 : f32 to vector<8x32xf32>
    %254 = arith.addf %253, %252 : vector<8x32xf32>
    %255 = arith.divf %253, %254 : vector<8x32xf32>
    %256 = vector.extract_strided_slice %238 {offsets = [0, 64], sizes = [8, 32], strides = [1, 1]} : vector<8x128xf32> to vector<8x32xf32>
    %257 = math.tanh %256 : vector<8x32xf32>
    %258 = vector.extract_strided_slice %238 {offsets = [0, 96], sizes = [8, 32], strides = [1, 1]} : vector<8x128xf32> to vector<8x32xf32>
    %259 = arith.negf %258 : vector<8x32xf32>
    %260 = math.exp %259 : vector<8x32xf32>
    %cst_67 = arith.constant 1.000000e+00 : f32
    %261 = vector.broadcast %cst_67 : f32 to vector<8x32xf32>
    %262 = arith.addf %261, %260 : vector<8x32xf32>
    %263 = arith.divf %261, %262 : vector<8x32xf32>
    %264 = arith.mulf %255, %193 : vector<8x32xf32>
    %265 = arith.mulf %249, %257 : vector<8x32xf32>
    %266 = arith.addf %264, %265 : vector<8x32xf32>
    %267 = math.tanh %266 : vector<8x32xf32>
    %268 = arith.mulf %263, %267 : vector<8x32xf32>
    %269 = vector.extract_strided_slice %243 {offsets = [0, 0], sizes = [8, 32], strides = [1, 1]} : vector<8x128xf32> to vector<8x32xf32>
    %270 = arith.negf %269 : vector<8x32xf32>
    %271 = math.exp %270 : vector<8x32xf32>
    %cst_68 = arith.constant 1.000000e+00 : f32
    %272 = vector.broadcast %cst_68 : f32 to vector<8x32xf32>
    %273 = arith.addf %272, %271 : vector<8x32xf32>
    %274 = arith.divf %272, %273 : vector<8x32xf32>
    %275 = vector.extract_strided_slice %243 {offsets = [0, 32], sizes = [8, 32], strides = [1, 1]} : vector<8x128xf32> to vector<8x32xf32>
    %276 = arith.negf %275 : vector<8x32xf32>
    %277 = math.exp %276 : vector<8x32xf32>
    %cst_69 = arith.constant 1.000000e+00 : f32
    %278 = vector.broadcast %cst_69 : f32 to vector<8x32xf32>
    %279 = arith.addf %278, %277 : vector<8x32xf32>
    %280 = arith.divf %278, %279 : vector<8x32xf32>
    %281 = vector.extract_strided_slice %243 {offsets = [0, 64], sizes = [8, 32], strides = [1, 1]} : vector<8x128xf32> to vector<8x32xf32>
    %282 = math.tanh %281 : vector<8x32xf32>
    %283 = vector.extract_strided_slice %243 {offsets = [0, 96], sizes = [8, 32], strides = [1, 1]} : vector<8x128xf32> to vector<8x32xf32>
    %284 = arith.negf %283 : vector<8x32xf32>
    %285 = math.exp %284 : vector<8x32xf32>
    %cst_70 = arith.constant 1.000000e+00 : f32
    %286 = vector.broadcast %cst_70 : f32 to vector<8x32xf32>
    %287 = arith.addf %286, %285 : vector<8x32xf32>
    %288 = arith.divf %286, %287 : vector<8x32xf32>
    %289 = arith.mulf %280, %218 : vector<8x32xf32>
    %290 = arith.mulf %274, %282 : vector<8x32xf32>
    %291 = arith.addf %289, %290 : vector<8x32xf32>
    %292 = math.tanh %291 : vector<8x32xf32>
    %293 = arith.mulf %288, %292 : vector<8x32xf32>
    %294 = arith.index_cast %c3_i32 : i32 to index
    %c0_71 = arith.constant 0 : index
    %c0_72 = arith.constant 0 : index
    %295 = vector.load %arg5[%294, %c0_71, %c0_72] : memref<8x8x64xf32, #tpu.memory_space<vmem>>, vector<1x8x32xf32>
    %296 = vector.shape_cast %295 : vector<1x8x32xf32> to vector<8x32xf32>
    %297 = vector.shape_cast %268 : vector<8x32xf32> to vector<1x8x32xf32>
    tpu.vector_store %arg5[%294, %c0_71, %c0_72], %297 {strides = array<i32>} : memref<8x8x64xf32, #tpu.memory_space<vmem>>, vector<1x8x32xf32>,
    %298 = arith.index_cast %232 : i32 to index
    %c0_73 = arith.constant 0 : index
    %c32_74 = arith.constant 32 : index
    %299 = vector.load %arg5[%298, %c0_73, %c32_74] : memref<8x8x64xf32, #tpu.memory_space<vmem>>, vector<1x8x32xf32>
    %300 = vector.shape_cast %299 : vector<1x8x32xf32> to vector<8x32xf32>
    %301 = vector.shape_cast %293 : vector<8x32xf32> to vector<1x8x32xf32>
    tpu.vector_store %arg5[%298, %c0_73, %c32_74], %301 {strides = array<i32>} : memref<8x8x64xf32, #tpu.memory_space<vmem>>, vector<1x8x32xf32>,
    %302 = arith.maximumf %229, %268 : vector<8x32xf32>
    %303 = arith.maximumf %230, %293 : vector<8x32xf32>
    %304 = tpu.concatenate %268, %293 in 1 : vector<8x32xf32>, vector<8x32xf32> -> vector<8x64xf32>
    %c4_i32 = arith.constant 4 : i32
    %c7_i32_75 = arith.constant 7 : i32
    %305 = arith.subi %c7_i32_75, %c4_i32 : i32
    %cst_76 = arith.constant dense<0.000000e+00> : vector<8x256xf32>
    %306 = tpu.matmul %304, %9, %cst_76 {dimension_numbers = #tpu.dot_dimension_numbers<[1], [0], [0], [1], [0, 0, 1, 1], [], []>} : vector<8x64xf32>, vector<64x256xf32>, vector<8x256xf32> -> vector<8x256xf32>
    %307 = arith.index_cast %c4_i32 : i32 to index
    %c0_77 = arith.constant 0 : index
    %c0_78 = arith.constant 0 : index
    %308 = vector.load %arg7[%307, %c0_77, %c0_78] : memref<8x8x256xf32, #tpu.memory_space<vmem>>, vector<1x8x128xf32>
    %309 = vector.shape_cast %308 : vector<1x8x128xf32> to vector<8x128xf32>
    %310 = vector.extract_strided_slice %306 {offsets = [0, 0], sizes = [8, 128], strides = [1, 1]} : vector<8x256xf32> to vector<8x128xf32>
    %311 = arith.addf %309, %310 : vector<8x128xf32>
    %312 = arith.index_cast %305 : i32 to index
    %c0_79 = arith.constant 0 : index
    %c128_80 = arith.constant 128 : index
    %313 = vector.load %arg7[%312, %c0_79, %c128_80] : memref<8x8x256xf32, #tpu.memory_space<vmem>>, vector<1x8x128xf32>
    %314 = vector.shape_cast %313 : vector<1x8x128xf32> to vector<8x128xf32>
    %315 = vector.extract_strided_slice %306 {offsets = [0, 128], sizes = [8, 128], strides = [1, 1]} : vector<8x256xf32> to vector<8x128xf32>
    %316 = arith.addf %314, %315 : vector<8x128xf32>
    %317 = vector.extract_strided_slice %311 {offsets = [0, 0], sizes = [8, 32], strides = [1, 1]} : vector<8x128xf32> to vector<8x32xf32>
    %318 = arith.negf %317 : vector<8x32xf32>
    %319 = math.exp %318 : vector<8x32xf32>
    %cst_81 = arith.constant 1.000000e+00 : f32
    %320 = vector.broadcast %cst_81 : f32 to vector<8x32xf32>
    %321 = arith.addf %320, %319 : vector<8x32xf32>
    %322 = arith.divf %320, %321 : vector<8x32xf32>
    %323 = vector.extract_strided_slice %311 {offsets = [0, 32], sizes = [8, 32], strides = [1, 1]} : vector<8x128xf32> to vector<8x32xf32>
    %324 = arith.negf %323 : vector<8x32xf32>
    %325 = math.exp %324 : vector<8x32xf32>
    %cst_82 = arith.constant 1.000000e+00 : f32
    %326 = vector.broadcast %cst_82 : f32 to vector<8x32xf32>
    %327 = arith.addf %326, %325 : vector<8x32xf32>
    %328 = arith.divf %326, %327 : vector<8x32xf32>
    %329 = vector.extract_strided_slice %311 {offsets = [0, 64], sizes = [8, 32], strides = [1, 1]} : vector<8x128xf32> to vector<8x32xf32>
    %330 = math.tanh %329 : vector<8x32xf32>
    %331 = vector.extract_strided_slice %311 {offsets = [0, 96], sizes = [8, 32], strides = [1, 1]} : vector<8x128xf32> to vector<8x32xf32>
    %332 = arith.negf %331 : vector<8x32xf32>
    %333 = math.exp %332 : vector<8x32xf32>
    %cst_83 = arith.constant 1.000000e+00 : f32
    %334 = vector.broadcast %cst_83 : f32 to vector<8x32xf32>
    %335 = arith.addf %334, %333 : vector<8x32xf32>
    %336 = arith.divf %334, %335 : vector<8x32xf32>
    %337 = arith.mulf %328, %266 : vector<8x32xf32>
    %338 = arith.mulf %322, %330 : vector<8x32xf32>
    %339 = arith.addf %337, %338 : vector<8x32xf32>
    %340 = math.tanh %339 : vector<8x32xf32>
    %341 = arith.mulf %336, %340 : vector<8x32xf32>
    %342 = vector.extract_strided_slice %316 {offsets = [0, 0], sizes = [8, 32], strides = [1, 1]} : vector<8x128xf32> to vector<8x32xf32>
    %343 = arith.negf %342 : vector<8x32xf32>
    %344 = math.exp %343 : vector<8x32xf32>
    %cst_84 = arith.constant 1.000000e+00 : f32
    %345 = vector.broadcast %cst_84 : f32 to vector<8x32xf32>
    %346 = arith.addf %345, %344 : vector<8x32xf32>
    %347 = arith.divf %345, %346 : vector<8x32xf32>
    %348 = vector.extract_strided_slice %316 {offsets = [0, 32], sizes = [8, 32], strides = [1, 1]} : vector<8x128xf32> to vector<8x32xf32>
    %349 = arith.negf %348 : vector<8x32xf32>
    %350 = math.exp %349 : vector<8x32xf32>
    %cst_85 = arith.constant 1.000000e+00 : f32
    %351 = vector.broadcast %cst_85 : f32 to vector<8x32xf32>
    %352 = arith.addf %351, %350 : vector<8x32xf32>
    %353 = arith.divf %351, %352 : vector<8x32xf32>
    %354 = vector.extract_strided_slice %316 {offsets = [0, 64], sizes = [8, 32], strides = [1, 1]} : vector<8x128xf32> to vector<8x32xf32>
    %355 = math.tanh %354 : vector<8x32xf32>
    %356 = vector.extract_strided_slice %316 {offsets = [0, 96], sizes = [8, 32], strides = [1, 1]} : vector<8x128xf32> to vector<8x32xf32>
    %357 = arith.negf %356 : vector<8x32xf32>
    %358 = math.exp %357 : vector<8x32xf32>
    %cst_86 = arith.constant 1.000000e+00 : f32
    %359 = vector.broadcast %cst_86 : f32 to vector<8x32xf32>
    %360 = arith.addf %359, %358 : vector<8x32xf32>
    %361 = arith.divf %359, %360 : vector<8x32xf32>
    %362 = arith.mulf %353, %291 : vector<8x32xf32>
    %363 = arith.mulf %347, %355 : vector<8x32xf32>
    %364 = arith.addf %362, %363 : vector<8x32xf32>
    %365 = math.tanh %364 : vector<8x32xf32>
    %366 = arith.mulf %361, %365 : vector<8x32xf32>
    %367 = arith.index_cast %c4_i32 : i32 to index
    %c0_87 = arith.constant 0 : index
    %c0_88 = arith.constant 0 : index
    %368 = vector.load %arg5[%367, %c0_87, %c0_88] : memref<8x8x64xf32, #tpu.memory_space<vmem>>, vector<1x8x32xf32>
    %369 = vector.shape_cast %368 : vector<1x8x32xf32> to vector<8x32xf32>
    %370 = vector.shape_cast %341 : vector<8x32xf32> to vector<1x8x32xf32>
    tpu.vector_store %arg5[%367, %c0_87, %c0_88], %370 {strides = array<i32>} : memref<8x8x64xf32, #tpu.memory_space<vmem>>, vector<1x8x32xf32>,
    %371 = arith.index_cast %305 : i32 to index
    %c0_89 = arith.constant 0 : index
    %c32_90 = arith.constant 32 : index
    %372 = vector.load %arg5[%371, %c0_89, %c32_90] : memref<8x8x64xf32, #tpu.memory_space<vmem>>, vector<1x8x32xf32>
    %373 = vector.shape_cast %372 : vector<1x8x32xf32> to vector<8x32xf32>
    %374 = vector.shape_cast %366 : vector<8x32xf32> to vector<1x8x32xf32>
    tpu.vector_store %arg5[%371, %c0_89, %c32_90], %374 {strides = array<i32>} : memref<8x8x64xf32, #tpu.memory_space<vmem>>, vector<1x8x32xf32>,
    %375 = arith.maximumf %302, %341 : vector<8x32xf32>
    %376 = arith.maximumf %303, %366 : vector<8x32xf32>
    %377 = tpu.concatenate %341, %366 in 1 : vector<8x32xf32>, vector<8x32xf32> -> vector<8x64xf32>
    %c5_i32 = arith.constant 5 : i32
    %c7_i32_91 = arith.constant 7 : i32
    %378 = arith.subi %c7_i32_91, %c5_i32 : i32
    %cst_92 = arith.constant dense<0.000000e+00> : vector<8x256xf32>
    %379 = tpu.matmul %377, %9, %cst_92 {dimension_numbers = #tpu.dot_dimension_numbers<[1], [0], [0], [1], [0, 0, 1, 1], [], []>} : vector<8x64xf32>, vector<64x256xf32>, vector<8x256xf32> -> vector<8x256xf32>
    %380 = arith.index_cast %c5_i32 : i32 to index
    %c0_93 = arith.constant 0 : index
    %c0_94 = arith.constant 0 : index
    %381 = vector.load %arg7[%380, %c0_93, %c0_94] : memref<8x8x256xf32, #tpu.memory_space<vmem>>, vector<1x8x128xf32>
    %382 = vector.shape_cast %381 : vector<1x8x128xf32> to vector<8x128xf32>
    %383 = vector.extract_strided_slice %379 {offsets = [0, 0], sizes = [8, 128], strides = [1, 1]} : vector<8x256xf32> to vector<8x128xf32>
    %384 = arith.addf %382, %383 : vector<8x128xf32>
    %385 = arith.index_cast %378 : i32 to index
    %c0_95 = arith.constant 0 : index
    %c128_96 = arith.constant 128 : index
    %386 = vector.load %arg7[%385, %c0_95, %c128_96] : memref<8x8x256xf32, #tpu.memory_space<vmem>>, vector<1x8x128xf32>
    %387 = vector.shape_cast %386 : vector<1x8x128xf32> to vector<8x128xf32>
    %388 = vector.extract_strided_slice %379 {offsets = [0, 128], sizes = [8, 128], strides = [1, 1]} : vector<8x256xf32> to vector<8x128xf32>
    %389 = arith.addf %387, %388 : vector<8x128xf32>
    %390 = vector.extract_strided_slice %384 {offsets = [0, 0], sizes = [8, 32], strides = [1, 1]} : vector<8x128xf32> to vector<8x32xf32>
    %391 = arith.negf %390 : vector<8x32xf32>
    %392 = math.exp %391 : vector<8x32xf32>
    %cst_97 = arith.constant 1.000000e+00 : f32
    %393 = vector.broadcast %cst_97 : f32 to vector<8x32xf32>
    %394 = arith.addf %393, %392 : vector<8x32xf32>
    %395 = arith.divf %393, %394 : vector<8x32xf32>
    %396 = vector.extract_strided_slice %384 {offsets = [0, 32], sizes = [8, 32], strides = [1, 1]} : vector<8x128xf32> to vector<8x32xf32>
    %397 = arith.negf %396 : vector<8x32xf32>
    %398 = math.exp %397 : vector<8x32xf32>
    %cst_98 = arith.constant 1.000000e+00 : f32
    %399 = vector.broadcast %cst_98 : f32 to vector<8x32xf32>
    %400 = arith.addf %399, %398 : vector<8x32xf32>
    %401 = arith.divf %399, %400 : vector<8x32xf32>
    %402 = vector.extract_strided_slice %384 {offsets = [0, 64], sizes = [8, 32], strides = [1, 1]} : vector<8x128xf32> to vector<8x32xf32>
    %403 = math.tanh %402 : vector<8x32xf32>
    %404 = vector.extract_strided_slice %384 {offsets = [0, 96], sizes = [8, 32], strides = [1, 1]} : vector<8x128xf32> to vector<8x32xf32>
    %405 = arith.negf %404 : vector<8x32xf32>
    %406 = math.exp %405 : vector<8x32xf32>
    %cst_99 = arith.constant 1.000000e+00 : f32
    %407 = vector.broadcast %cst_99 : f32 to vector<8x32xf32>
    %408 = arith.addf %407, %406 : vector<8x32xf32>
    %409 = arith.divf %407, %408 : vector<8x32xf32>
    %410 = arith.mulf %401, %339 : vector<8x32xf32>
    %411 = arith.mulf %395, %403 : vector<8x32xf32>
    %412 = arith.addf %410, %411 : vector<8x32xf32>
    %413 = math.tanh %412 : vector<8x32xf32>
    %414 = arith.mulf %409, %413 : vector<8x32xf32>
    %415 = vector.extract_strided_slice %389 {offsets = [0, 0], sizes = [8, 32], strides = [1, 1]} : vector<8x128xf32> to vector<8x32xf32>
    %416 = arith.negf %415 : vector<8x32xf32>
    %417 = math.exp %416 : vector<8x32xf32>
    %cst_100 = arith.constant 1.000000e+00 : f32
    %418 = vector.broadcast %cst_100 : f32 to vector<8x32xf32>
    %419 = arith.addf %418, %417 : vector<8x32xf32>
    %420 = arith.divf %418, %419 : vector<8x32xf32>
    %421 = vector.extract_strided_slice %389 {offsets = [0, 32], sizes = [8, 32], strides = [1, 1]} : vector<8x128xf32> to vector<8x32xf32>
    %422 = arith.negf %421 : vector<8x32xf32>
    %423 = math.exp %422 : vector<8x32xf32>
    %cst_101 = arith.constant 1.000000e+00 : f32
    %424 = vector.broadcast %cst_101 : f32 to vector<8x32xf32>
    %425 = arith.addf %424, %423 : vector<8x32xf32>
    %426 = arith.divf %424, %425 : vector<8x32xf32>
    %427 = vector.extract_strided_slice %389 {offsets = [0, 64], sizes = [8, 32], strides = [1, 1]} : vector<8x128xf32> to vector<8x32xf32>
    %428 = math.tanh %427 : vector<8x32xf32>
    %429 = vector.extract_strided_slice %389 {offsets = [0, 96], sizes = [8, 32], strides = [1, 1]} : vector<8x128xf32> to vector<8x32xf32>
    %430 = arith.negf %429 : vector<8x32xf32>
    %431 = math.exp %430 : vector<8x32xf32>
    %cst_102 = arith.constant 1.000000e+00 : f32
    %432 = vector.broadcast %cst_102 : f32 to vector<8x32xf32>
    %433 = arith.addf %432, %431 : vector<8x32xf32>
    %434 = arith.divf %432, %433 : vector<8x32xf32>
    %435 = arith.mulf %426, %364 : vector<8x32xf32>
    %436 = arith.mulf %420, %428 : vector<8x32xf32>
    %437 = arith.addf %435, %436 : vector<8x32xf32>
    %438 = math.tanh %437 : vector<8x32xf32>
    %439 = arith.mulf %434, %438 : vector<8x32xf32>
    %440 = arith.index_cast %c5_i32 : i32 to index
    %c0_103 = arith.constant 0 : index
    %c0_104 = arith.constant 0 : index
    %441 = vector.load %arg5[%440, %c0_103, %c0_104] : memref<8x8x64xf32, #tpu.memory_space<vmem>>, vector<1x8x32xf32>
    %442 = vector.shape_cast %441 : vector<1x8x32xf32> to vector<8x32xf32>
    %443 = vector.shape_cast %414 : vector<8x32xf32> to vector<1x8x32xf32>
    tpu.vector_store %arg5[%440, %c0_103, %c0_104], %443 {strides = array<i32>} : memref<8x8x64xf32, #tpu.memory_space<vmem>>, vector<1x8x32xf32>,
    %444 = arith.index_cast %378 : i32 to index
    %c0_105 = arith.constant 0 : index
    %c32_106 = arith.constant 32 : index
    %445 = vector.load %arg5[%444, %c0_105, %c32_106] : memref<8x8x64xf32, #tpu.memory_space<vmem>>, vector<1x8x32xf32>
    %446 = vector.shape_cast %445 : vector<1x8x32xf32> to vector<8x32xf32>
    %447 = vector.shape_cast %439 : vector<8x32xf32> to vector<1x8x32xf32>
    tpu.vector_store %arg5[%444, %c0_105, %c32_106], %447 {strides = array<i32>} : memref<8x8x64xf32, #tpu.memory_space<vmem>>, vector<1x8x32xf32>,
    %448 = arith.maximumf %375, %414 : vector<8x32xf32>
    %449 = arith.maximumf %376, %439 : vector<8x32xf32>
    %450 = tpu.concatenate %414, %439 in 1 : vector<8x32xf32>, vector<8x32xf32> -> vector<8x64xf32>
    %c6_i32 = arith.constant 6 : i32
    %c7_i32_107 = arith.constant 7 : i32
    %451 = arith.subi %c7_i32_107, %c6_i32 : i32
    %cst_108 = arith.constant dense<0.000000e+00> : vector<8x256xf32>
    %452 = tpu.matmul %450, %9, %cst_108 {dimension_numbers = #tpu.dot_dimension_numbers<[1], [0], [0], [1], [0, 0, 1, 1], [], []>} : vector<8x64xf32>, vector<64x256xf32>, vector<8x256xf32> -> vector<8x256xf32>
    %453 = arith.index_cast %c6_i32 : i32 to index
    %c0_109 = arith.constant 0 : index
    %c0_110 = arith.constant 0 : index
    %454 = vector.load %arg7[%453, %c0_109, %c0_110] : memref<8x8x256xf32, #tpu.memory_space<vmem>>, vector<1x8x128xf32>
    %455 = vector.shape_cast %454 : vector<1x8x128xf32> to vector<8x128xf32>
    %456 = vector.extract_strided_slice %452 {offsets = [0, 0], sizes = [8, 128], strides = [1, 1]} : vector<8x256xf32> to vector<8x128xf32>
    %457 = arith.addf %455, %456 : vector<8x128xf32>
    %458 = arith.index_cast %451 : i32 to index
    %c0_111 = arith.constant 0 : index
    %c128_112 = arith.constant 128 : index
    %459 = vector.load %arg7[%458, %c0_111, %c128_112] : memref<8x8x256xf32, #tpu.memory_space<vmem>>, vector<1x8x128xf32>
    %460 = vector.shape_cast %459 : vector<1x8x128xf32> to vector<8x128xf32>
    %461 = vector.extract_strided_slice %452 {offsets = [0, 128], sizes = [8, 128], strides = [1, 1]} : vector<8x256xf32> to vector<8x128xf32>
    %462 = arith.addf %460, %461 : vector<8x128xf32>
    %463 = vector.extract_strided_slice %457 {offsets = [0, 0], sizes = [8, 32], strides = [1, 1]} : vector<8x128xf32> to vector<8x32xf32>
    %464 = arith.negf %463 : vector<8x32xf32>
    %465 = math.exp %464 : vector<8x32xf32>
    %cst_113 = arith.constant 1.000000e+00 : f32
    %466 = vector.broadcast %cst_113 : f32 to vector<8x32xf32>
    %467 = arith.addf %466, %465 : vector<8x32xf32>
    %468 = arith.divf %466, %467 : vector<8x32xf32>
    %469 = vector.extract_strided_slice %457 {offsets = [0, 32], sizes = [8, 32], strides = [1, 1]} : vector<8x128xf32> to vector<8x32xf32>
    %470 = arith.negf %469 : vector<8x32xf32>
    %471 = math.exp %470 : vector<8x32xf32>
    %cst_114 = arith.constant 1.000000e+00 : f32
    %472 = vector.broadcast %cst_114 : f32 to vector<8x32xf32>
    %473 = arith.addf %472, %471 : vector<8x32xf32>
    %474 = arith.divf %472, %473 : vector<8x32xf32>
    %475 = vector.extract_strided_slice %457 {offsets = [0, 64], sizes = [8, 32], strides = [1, 1]} : vector<8x128xf32> to vector<8x32xf32>
    %476 = math.tanh %475 : vector<8x32xf32>
    %477 = vector.extract_strided_slice %457 {offsets = [0, 96], sizes = [8, 32], strides = [1, 1]} : vector<8x128xf32> to vector<8x32xf32>
    %478 = arith.negf %477 : vector<8x32xf32>
    %479 = math.exp %478 : vector<8x32xf32>
    %cst_115 = arith.constant 1.000000e+00 : f32
    %480 = vector.broadcast %cst_115 : f32 to vector<8x32xf32>
    %481 = arith.addf %480, %479 : vector<8x32xf32>
    %482 = arith.divf %480, %481 : vector<8x32xf32>
    %483 = arith.mulf %474, %412 : vector<8x32xf32>
    %484 = arith.mulf %468, %476 : vector<8x32xf32>
    %485 = arith.addf %483, %484 : vector<8x32xf32>
    %486 = math.tanh %485 : vector<8x32xf32>
    %487 = arith.mulf %482, %486 : vector<8x32xf32>
    %488 = vector.extract_strided_slice %462 {offsets = [0, 0], sizes = [8, 32], strides = [1, 1]} : vector<8x128xf32> to vector<8x32xf32>
    %489 = arith.negf %488 : vector<8x32xf32>
    %490 = math.exp %489 : vector<8x32xf32>
    %cst_116 = arith.constant 1.000000e+00 : f32
    %491 = vector.broadcast %cst_116 : f32 to vector<8x32xf32>
    %492 = arith.addf %491, %490 : vector<8x32xf32>
    %493 = arith.divf %491, %492 : vector<8x32xf32>
    %494 = vector.extract_strided_slice %462 {offsets = [0, 32], sizes = [8, 32], strides = [1, 1]} : vector<8x128xf32> to vector<8x32xf32>
    %495 = arith.negf %494 : vector<8x32xf32>
    %496 = math.exp %495 : vector<8x32xf32>
    %cst_117 = arith.constant 1.000000e+00 : f32
    %497 = vector.broadcast %cst_117 : f32 to vector<8x32xf32>
    %498 = arith.addf %497, %496 : vector<8x32xf32>
    %499 = arith.divf %497, %498 : vector<8x32xf32>
    %500 = vector.extract_strided_slice %462 {offsets = [0, 64], sizes = [8, 32], strides = [1, 1]} : vector<8x128xf32> to vector<8x32xf32>
    %501 = math.tanh %500 : vector<8x32xf32>
    %502 = vector.extract_strided_slice %462 {offsets = [0, 96], sizes = [8, 32], strides = [1, 1]} : vector<8x128xf32> to vector<8x32xf32>
    %503 = arith.negf %502 : vector<8x32xf32>
    %504 = math.exp %503 : vector<8x32xf32>
    %cst_118 = arith.constant 1.000000e+00 : f32
    %505 = vector.broadcast %cst_118 : f32 to vector<8x32xf32>
    %506 = arith.addf %505, %504 : vector<8x32xf32>
    %507 = arith.divf %505, %506 : vector<8x32xf32>
    %508 = arith.mulf %499, %437 : vector<8x32xf32>
    %509 = arith.mulf %493, %501 : vector<8x32xf32>
    %510 = arith.addf %508, %509 : vector<8x32xf32>
    %511 = math.tanh %510 : vector<8x32xf32>
    %512 = arith.mulf %507, %511 : vector<8x32xf32>
    %513 = arith.index_cast %c6_i32 : i32 to index
    %c0_119 = arith.constant 0 : index
    %c0_120 = arith.constant 0 : index
    %514 = vector.load %arg5[%513, %c0_119, %c0_120] : memref<8x8x64xf32, #tpu.memory_space<vmem>>, vector<1x8x32xf32>
    %515 = vector.shape_cast %514 : vector<1x8x32xf32> to vector<8x32xf32>
    %516 = vector.shape_cast %487 : vector<8x32xf32> to vector<1x8x32xf32>
    tpu.vector_store %arg5[%513, %c0_119, %c0_120], %516 {strides = array<i32>} : memref<8x8x64xf32, #tpu.memory_space<vmem>>, vector<1x8x32xf32>,
    %517 = arith.index_cast %451 : i32 to index
    %c0_121 = arith.constant 0 : index
    %c32_122 = arith.constant 32 : index
    %518 = vector.load %arg5[%517, %c0_121, %c32_122] : memref<8x8x64xf32, #tpu.memory_space<vmem>>, vector<1x8x32xf32>
    %519 = vector.shape_cast %518 : vector<1x8x32xf32> to vector<8x32xf32>
    %520 = vector.shape_cast %512 : vector<8x32xf32> to vector<1x8x32xf32>
    tpu.vector_store %arg5[%517, %c0_121, %c32_122], %520 {strides = array<i32>} : memref<8x8x64xf32, #tpu.memory_space<vmem>>, vector<1x8x32xf32>,
    %521 = arith.maximumf %448, %487 : vector<8x32xf32>
    %522 = arith.maximumf %449, %512 : vector<8x32xf32>
    %523 = tpu.concatenate %487, %512 in 1 : vector<8x32xf32>, vector<8x32xf32> -> vector<8x64xf32>
    %c7_i32_123 = arith.constant 7 : i32
    %c7_i32_124 = arith.constant 7 : i32
    %524 = arith.subi %c7_i32_124, %c7_i32_123 : i32
    %cst_125 = arith.constant dense<0.000000e+00> : vector<8x256xf32>
    %525 = tpu.matmul %523, %9, %cst_125 {dimension_numbers = #tpu.dot_dimension_numbers<[1], [0], [0], [1], [0, 0, 1, 1], [], []>} : vector<8x64xf32>, vector<64x256xf32>, vector<8x256xf32> -> vector<8x256xf32>
    %526 = arith.index_cast %c7_i32_123 : i32 to index
    %c0_126 = arith.constant 0 : index
    %c0_127 = arith.constant 0 : index
    %527 = vector.load %arg7[%526, %c0_126, %c0_127] : memref<8x8x256xf32, #tpu.memory_space<vmem>>, vector<1x8x128xf32>
    %528 = vector.shape_cast %527 : vector<1x8x128xf32> to vector<8x128xf32>
    %529 = vector.extract_strided_slice %525 {offsets = [0, 0], sizes = [8, 128], strides = [1, 1]} : vector<8x256xf32> to vector<8x128xf32>
    %530 = arith.addf %528, %529 : vector<8x128xf32>
    %531 = arith.index_cast %524 : i32 to index
    %c0_128 = arith.constant 0 : index
    %c128_129 = arith.constant 128 : index
    %532 = vector.load %arg7[%531, %c0_128, %c128_129] : memref<8x8x256xf32, #tpu.memory_space<vmem>>, vector<1x8x128xf32>
    %533 = vector.shape_cast %532 : vector<1x8x128xf32> to vector<8x128xf32>
    %534 = vector.extract_strided_slice %525 {offsets = [0, 128], sizes = [8, 128], strides = [1, 1]} : vector<8x256xf32> to vector<8x128xf32>
    %535 = arith.addf %533, %534 : vector<8x128xf32>
    %536 = vector.extract_strided_slice %530 {offsets = [0, 0], sizes = [8, 32], strides = [1, 1]} : vector<8x128xf32> to vector<8x32xf32>
    %537 = arith.negf %536 : vector<8x32xf32>
    %538 = math.exp %537 : vector<8x32xf32>
    %cst_130 = arith.constant 1.000000e+00 : f32
    %539 = vector.broadcast %cst_130 : f32 to vector<8x32xf32>
    %540 = arith.addf %539, %538 : vector<8x32xf32>
    %541 = arith.divf %539, %540 : vector<8x32xf32>
    %542 = vector.extract_strided_slice %530 {offsets = [0, 32], sizes = [8, 32], strides = [1, 1]} : vector<8x128xf32> to vector<8x32xf32>
    %543 = arith.negf %542 : vector<8x32xf32>
    %544 = math.exp %543 : vector<8x32xf32>
    %cst_131 = arith.constant 1.000000e+00 : f32
    %545 = vector.broadcast %cst_131 : f32 to vector<8x32xf32>
    %546 = arith.addf %545, %544 : vector<8x32xf32>
    %547 = arith.divf %545, %546 : vector<8x32xf32>
    %548 = vector.extract_strided_slice %530 {offsets = [0, 64], sizes = [8, 32], strides = [1, 1]} : vector<8x128xf32> to vector<8x32xf32>
    %549 = math.tanh %548 : vector<8x32xf32>
    %550 = vector.extract_strided_slice %530 {offsets = [0, 96], sizes = [8, 32], strides = [1, 1]} : vector<8x128xf32> to vector<8x32xf32>
    %551 = arith.negf %550 : vector<8x32xf32>
    %552 = math.exp %551 : vector<8x32xf32>
    %cst_132 = arith.constant 1.000000e+00 : f32
    %553 = vector.broadcast %cst_132 : f32 to vector<8x32xf32>
    %554 = arith.addf %553, %552 : vector<8x32xf32>
    %555 = arith.divf %553, %554 : vector<8x32xf32>
    %556 = arith.mulf %547, %485 : vector<8x32xf32>
    %557 = arith.mulf %541, %549 : vector<8x32xf32>
    %558 = arith.addf %556, %557 : vector<8x32xf32>
    %559 = math.tanh %558 : vector<8x32xf32>
    %560 = arith.mulf %555, %559 : vector<8x32xf32>
    %561 = vector.extract_strided_slice %535 {offsets = [0, 0], sizes = [8, 32], strides = [1, 1]} : vector<8x128xf32> to vector<8x32xf32>
    %562 = arith.negf %561 : vector<8x32xf32>
    %563 = math.exp %562 : vector<8x32xf32>
    %cst_133 = arith.constant 1.000000e+00 : f32
    %564 = vector.broadcast %cst_133 : f32 to vector<8x32xf32>
    %565 = arith.addf %564, %563 : vector<8x32xf32>
    %566 = arith.divf %564, %565 : vector<8x32xf32>
    %567 = vector.extract_strided_slice %535 {offsets = [0, 32], sizes = [8, 32], strides = [1, 1]} : vector<8x128xf32> to vector<8x32xf32>
    %568 = arith.negf %567 : vector<8x32xf32>
    %569 = math.exp %568 : vector<8x32xf32>
    %cst_134 = arith.constant 1.000000e+00 : f32
    %570 = vector.broadcast %cst_134 : f32 to vector<8x32xf32>
    %571 = arith.addf %570, %569 : vector<8x32xf32>
    %572 = arith.divf %570, %571 : vector<8x32xf32>
    %573 = vector.extract_strided_slice %535 {offsets = [0, 64], sizes = [8, 32], strides = [1, 1]} : vector<8x128xf32> to vector<8x32xf32>
    %574 = math.tanh %573 : vector<8x32xf32>
    %575 = vector.extract_strided_slice %535 {offsets = [0, 96], sizes = [8, 32], strides = [1, 1]} : vector<8x128xf32> to vector<8x32xf32>
    %576 = arith.negf %575 : vector<8x32xf32>
    %577 = math.exp %576 : vector<8x32xf32>
    %cst_135 = arith.constant 1.000000e+00 : f32
    %578 = vector.broadcast %cst_135 : f32 to vector<8x32xf32>
    %579 = arith.addf %578, %577 : vector<8x32xf32>
    %580 = arith.divf %578, %579 : vector<8x32xf32>
    %581 = arith.mulf %572, %510 : vector<8x32xf32>
    %582 = arith.mulf %566, %574 : vector<8x32xf32>
    %583 = arith.addf %581, %582 : vector<8x32xf32>
    %584 = math.tanh %583 : vector<8x32xf32>
    %585 = arith.mulf %580, %584 : vector<8x32xf32>
    %586 = arith.index_cast %c7_i32_123 : i32 to index
    %c0_136 = arith.constant 0 : index
    %c0_137 = arith.constant 0 : index
    %587 = vector.load %arg5[%586, %c0_136, %c0_137] : memref<8x8x64xf32, #tpu.memory_space<vmem>>, vector<1x8x32xf32>
    %588 = vector.shape_cast %587 : vector<1x8x32xf32> to vector<8x32xf32>
    %589 = vector.shape_cast %560 : vector<8x32xf32> to vector<1x8x32xf32>
    tpu.vector_store %arg5[%586, %c0_136, %c0_137], %589 {strides = array<i32>} : memref<8x8x64xf32, #tpu.memory_space<vmem>>, vector<1x8x32xf32>,
    %590 = arith.index_cast %524 : i32 to index
    %c0_138 = arith.constant 0 : index
    %c32_139 = arith.constant 32 : index
    %591 = vector.load %arg5[%590, %c0_138, %c32_139] : memref<8x8x64xf32, #tpu.memory_space<vmem>>, vector<1x8x32xf32>
    %592 = vector.shape_cast %591 : vector<1x8x32xf32> to vector<8x32xf32>
    %593 = vector.shape_cast %585 : vector<8x32xf32> to vector<1x8x32xf32>
    tpu.vector_store %arg5[%590, %c0_138, %c32_139], %593 {strides = array<i32>} : memref<8x8x64xf32, #tpu.memory_space<vmem>>, vector<1x8x32xf32>,
    %594 = arith.maximumf %521, %560 : vector<8x32xf32>
    %595 = arith.maximumf %522, %585 : vector<8x32xf32>
    %596 = tpu.concatenate %560, %585 in 1 : vector<8x32xf32>, vector<8x32xf32> -> vector<8x64xf32>
    %c8_i32 = arith.constant 8 : i32
    %c0_140 = arith.constant 0 : index
    %c0_141 = arith.constant 0 : index
    %597 = vector.load %arg6[%c0_140, %c0_141] : memref<8x64xf32, #tpu.memory_space<vmem>>, vector<8x32xf32>
    tpu.vector_store %arg6[%c0_140, %c0_141], %594 {strides = array<i32>} : memref<8x64xf32, #tpu.memory_space<vmem>>, vector<8x32xf32>,
    %c0_142 = arith.constant 0 : index
    %c32_143 = arith.constant 32 : index
    %598 = vector.load %arg6[%c0_142, %c32_143] : memref<8x64xf32, #tpu.memory_space<vmem>>, vector<8x32xf32>
    tpu.vector_store %arg6[%c0_142, %c32_143], %595 {strides = array<i32>} : memref<8x64xf32, #tpu.memory_space<vmem>>, vector<8x32xf32>,
    return
  }
  func.func @transform_0(%arg0: i32) -> (i32, i32, i32) {
    %c0_i32 = arith.constant 0 : i32
    %c0_i32_0 = arith.constant 0 : i32
    %c0_i32_1 = arith.constant 0 : i32
    return %c0_i32, %arg0, %c0_i32_0 : i32, i32, i32
  }
  func.func @transform_1(%arg0: i32) -> (i32, i32) {
    %c0_i32 = arith.constant 0 : i32
    %c0_i32_0 = arith.constant 0 : i32
    %c0_i32_1 = arith.constant 0 : i32
    return %c0_i32, %c0_i32_0 : i32, i32
  }
  func.func @transform_2(%arg0: i32) -> (i32, i32) {
    %c0_i32 = arith.constant 0 : i32
    %c0_i32_0 = arith.constant 0 : i32
    %c0_i32_1 = arith.constant 0 : i32
    return %c0_i32, %c0_i32_0 : i32, i32
  }
  func.func @transform_3(%arg0: i32) -> (i32, i32) {
    %c0_i32 = arith.constant 0 : i32
    %c0_i32_0 = arith.constant 0 : i32
    %c0_i32_1 = arith.constant 0 : i32
    return %c0_i32, %c0_i32_0 : i32, i32
  }
  func.func @transform_4(%arg0: i32) -> (i32, i32, i32) {
    %c0_i32 = arith.constant 0 : i32
    %c0_i32_0 = arith.constant 0 : i32
    %c0_i32_1 = arith.constant 0 : i32
    return %c0_i32, %arg0, %c0_i32_0 : i32, i32, i32
  }
  func.func @transform_5(%arg0: i32) -> (i32, i32) {
    %c0_i32 = arith.constant 0 : i32
    %c0_i32_0 = arith.constant 0 : i32
    return %arg0, %c0_i32 : i32, i32
  }
}

</mosaic_0001>

<bundles_post_ra>
// kernel: tpu_custom_call.1
= control target key start
LH: loop header
LB: loop body
LE: loop exit
PB: predicated region body
PF: predicated region fallthrough
CT: control target
= control target key end

     0   :  { %11 = vsyncpa [#allocation4], 0  ;;  %s2179_s0 = inlined_call_operand.hbm [shape: f32[8,8,32], index: 0, kind: input, shape index: {}]   ;;  %s2180_s1 = inlined_call_operand.hbm [shape: f32[32,256], index: 1, kind: input, shape index: {}]   ;;  %s2181_s2 = inlined_call_operand.vmem [shape: f32[1,256], index: 2, kind: input, shape index: {}]   ;;  %s2182_s3 = inlined_call_operand.hbm [shape: f32[64,256], index: 3, kind: input, shape index: {}]   ;;  %s2183_s4 = inlined_call_operand.hbm [shape: f32[8,8,64], index: 4, kind: output, shape index: {0}]   ;;  %s2184_s5 = inlined_call_operand.hbm [shape: f32[8,64], index: 5, kind: output, shape index: {1}]  }
   0x1   :  { %12 = vsyncpa [#allocation7], 0 }
   0x2   :  { %13 = vsyncpa [#allocation5], 0 }
   0x3   :  { %14 = vsyncpa [#allocation11], 0  ;;  %s1706_s18 = smov [#allocation6]  }
   0x4   :  { %s32_s19 = sshll.u32 %s1706_s18, 4  ;;  %s33_s19 = int_to_ptr.vmem [resolvable:$true] %s32_s19 }
   0x5   :  { %s1606_s20 = scalar_lea.vmem %s33_s19, 1024  ;;  %p1611_p1 = scmp.lt.s32.totalorder %s33_s19, %s33_s19 }
   0x6   :  { %p1607_p0 = scmp.ne.s32.totalorder %s33_s19, %s1606_s20  ;;  %p1612_p2 = scmp.lt.s32.totalorder %s1606_s20, %s1606_s20 }
   0x8   :  { %p1613_p3 = por %p1612_p2, %p1611_p1 }
   0xa   :  { %p1614_p4 = pnand %p1613_p3, %p1607_p0 }
   0xc   :  { %1617 = shalt.err (!%p1614_p4)
}
   0xd   :  { %s1707_s21 = smov 256   ;;  %s1708_s22 = smov 16  }
   0xe   :  { %38 = dma.hbm_to_vmem [thread:$0]  %s2180_s1, 1024, %s33_s19, [#allocation7], %s1707_s21, %s1707_s21, %s1708_s22  }
   0xf   :  { %s1709_s25 = smov [#allocation3]  }
  0x10   :  { %s20_s26 = sshll.u32 %s1709_s25, 4  ;;  %s21_s26 = int_to_ptr.vmem [resolvable:$true] %s20_s26 }
  0x11   :  { %s1626_s27 = scalar_lea.vmem %s21_s26, 1024  ;;  %p1631_p6 = scmp.lt.s32.totalorder %s21_s26, %s21_s26 }
  0x12   :  { %p1627_p5 = scmp.ne.s32.totalorder %s21_s26, %s1626_s27  ;;  %p1632_p7 = scmp.lt.s32.totalorder %s1626_s27, %s1626_s27 }
  0x14   :  { %p1633_p8 = por %p1632_p7, %p1631_p6 }
  0x16   :  { %p1634_p9 = pnand %p1633_p8, %p1627_p5 }
  0x18   :  { %1637 = shalt.err (!%p1634_p9)
}
  0x19   :  { %s1710_s28 = smov 128   ;;  %s1711_s29 = smov 8  }
  0x1a   :  { %26 = dma.hbm_to_vmem [thread:$0]  %s2179_s0, 1024, %s21_s26, [#allocation4], %s1710_s28, %s1710_s28, %s1711_s29  }
  0x1b   :  { %s1712_s1 = smov [#allocation8]  }
  0x1c   :  { %s46_s7 = sshll.u32 %s1712_s1, 4  ;;  %s47_s7 = int_to_ptr.vmem [resolvable:$true] %s46_s7 }
  0x1d   :  { %s1646_s8 = scalar_lea.vmem %s47_s7, 2048  ;;  %p1651_p11 = scmp.lt.s32.totalorder %s47_s7, %s47_s7 }
  0x1e   :  { %p1647_p10 = scmp.ne.s32.totalorder %s47_s7, %s1646_s8  ;;  %p1652_p12 = scmp.lt.s32.totalorder %s1646_s8, %s1646_s8 }
  0x20   :  { %p1653_p13 = por %p1652_p12, %p1651_p11 }
  0x22   :  { %p1654_p0 = pnand %p1653_p13, %p1647_p10 }
  0x24   :  { %1657 = shalt.err (!%p1654_p0)
}
  0x25   :  { %52 = dma.hbm_to_vmem [thread:$0]  %s2182_s3, 2048, %s47_s7, [#allocation7], %s1707_s21, %s1707_s21, %s1708_s22  }
  0x26   :  { %1698 = dma.done.wait [#allocation4], 1024  }
  0x27   :  { %1699 = vsyncadd [#allocation4], 4294966272 }
  0x28   :  { %1700 = dma.done.wait [#allocation7], 3072  }
  0x29   :  { %1701 = vsyncadd [#allocation7], 4294964224  ;;  %v1713_v0 = vmov 0.0   ;;  %v77_v1 = vld [vmem:[#allocation6 + $0x38] sm:$0xff]  ;;  %v76_v3 = vld [vmem:[#allocation6 + $0x30] sm:$0xff]  ;;  %vm90_vm0 = vcmask 261120   ;;  %v80_v33 = vlaneseq }
  0x2a   :  { %179 = vmatprep.mubr.f32.mxu0 %v1713_v0  ;;  %328 = vmatprep.mubr.f32.mxu1 %v1713_v0  ;;  %v1762_v2 = vld [vmem:[#allocation8 + $0x78] sm:$0xff]  ;;  %v1765_v4 = vld [vmem:[#allocation8 + $0x70] sm:$0xff]  ;;  %v75_v5 = vld [vmem:[#allocation6 + $0x28] sm:$0xff]  ;;  %s1715_s11 = smov 32   ;;  %vm398_vm1 = vcmask 523520   ;;  %vm260_vm2 = vcmask 523264  }
  0x2b   :  { %139 = vmatprep.subr.mxu0 %v77_v1  ;;  %280 = vmatprep.subr.mxu1 %v1762_v2  ;;  %v1767_v6 = vld [vmem:[#allocation8 + $0x68] sm:$0xff]  ;;  %v74_v7 = vld [vmem:[#allocation6 + $0x20] sm:$0xff]  ;;  %v73_v9 = vld [vmem:[#allocation6 + $0x18] sm:$0xff]  ;;  %v81_v34 = vshrl.u32 %v80_v33, 7  ;;  %s1716_s12 = smov [#allocation10]   ;;  %s1717_s14 = smov [#allocation9]  }
  0x2c   :  { %140 = vmatpush1.msra.mxu0 %v76_v3  ;;  %281 = vmatpush1.msra.mxu1 %v1765_v4  ;;  %v1770_v8 = vld [vmem:[#allocation8 + $0x60] sm:$0xff]  ;;  %v1773_v10 = vld [vmem:[#allocation8 + $0x58] sm:$0xff]  ;;  %v72_v11 = vld [vmem:[#allocation6 + $0x10] sm:$0xff]  ;;  %s1413_s13 = sshll.u32 %s1716_s12, 4  ;;  %s1400_s15 = sshll.u32 %s1717_s14, 4  ;;  %s1414_s13 = int_to_ptr.vmem [resolvable:$true] %s1413_s13  ;;  %s1401_s15 = int_to_ptr.vmem [resolvable:$true] %s1400_s15 }
  0x2d   :  { %141 = vmatprep.subr.mxu0 %v75_v5  ;;  %282 = vmatprep.subr.mxu1 %v1767_v6  ;;  %v1775_v12 = vld [vmem:[#allocation8 + $0x50] sm:$0xff]  ;;  %v71_v13 = vld [vmem:[#allocation6 + $0x8] sm:$0xff]  ;;  %v70_v15 = vld [vmem:[#allocation6] sm:$0xff]  ;;  %v86_v35 = vsub.s32 1, %v81_v34  ;;  %v82_v37 = vsub.s32 0, %v81_v34  ;;  %s1658_s16 = scalar_lea.vmem %s1414_s13, 128  ;;  %p1663_p2 = scmp.lt.s32.totalorder %s1414_s13, %s1414_s13 }
  0x2e   :  { %142 = vmatpush1.msra.mxu0 %v74_v7  ;;  %283 = vmatpush1.msra.mxu1 %v1770_v8  ;;  %v1778_v14 = vld [vmem:[#allocation8 + $0x48] sm:$0xff]  ;;  %v1781_v16 = vld [vmem:[#allocation8 + $0x40] sm:$0xff]  ;;  %v1784_v18 = vld [vmem:[#allocation8 + $0x38] sm:$0xff]  ;;  %p1659_p1 = scmp.ne.s32.totalorder %s1414_s13, %s1658_s16  ;;  %p1664_p3 = scmp.lt.s32.totalorder %s1658_s16, %s1658_s16 }
  0x2f   :  { %143 = vmatprep.subr.mxu0 %v73_v9  ;;  %284 = vmatprep.subr.mxu1 %v1773_v10  ;;  %v62_v17 = vld [vmem:[#allocation3] sm:$0xff]  ;;  %v1787_v19 = vld [vmem:[#allocation8 + $0x30] sm:$0xff]  ;;  %v1790_v20 = vld [vmem:[#allocation8 + $0x28] sm:$0xff] }
  0x30   :  { %144 = vmatpush1.msra.mxu0 %v72_v11  ;;  %285 = vmatpush1.msra.mxu1 %v1775_v12  ;;  %v1794_v21 = vld [vmem:[#allocation8 + $0x20] sm:$0xff]  ;;  %v63_v22 = vld [vmem:[#allocation3 + $0x8] sm:$0xff]  ;;  %v1798_v23 = vld [vmem:[#allocation8 + $0x18] sm:$0xff]  ;;  %p1665_p4 = por %p1664_p3, %p1663_p2 }
  0x31   :  { %145 = vmatprep.subr.mxu0 %v71_v13  ;;  %286 = vmatprep.subr.mxu1 %v1778_v14  ;;  %v1801_v24 = vld [vmem:[#allocation8 + $0x10] sm:$0xff]  ;;  %v1805_v25 = vld [vmem:[#allocation8 + $0x8] sm:$0xff]  ;;  %v1810_v26 = vld [vmem:[#allocation8] sm:$0xff] }
  0x32   :  { %146 = vmatpush1.msra.mxu0 %v70_v15  ;;  %287 = vmatpush1.msra.mxu1 %v1781_v16  ;;  %v64_v27 = vld [vmem:[#allocation3 + $0x10] sm:$0xff]  ;;  %v65_v28 = vld [vmem:[#allocation3 + $0x18] sm:$0xff]  ;;  %v66_v29 = vld [vmem:[#allocation3 + $0x20] sm:$0xff]  ;;  %p1666_p5 = pnand %p1665_p4, %p1659_p1 }
  0x33   :  { %1427 = vmatmul.mubr.msk.f32.vlgmr.msra.gmra.mxu0 %vm90_vm0, %v62_v17  ;;  %288 = vmatprep.subr.mxu1 %v1784_v18  ;;  %v67_v30 = vld [vmem:[#allocation3 + $0x28] sm:$0xff]  ;;  %v68_v31 = vld [vmem:[#allocation3 + $0x30] sm:$0xff]  ;;  %v69_v32 = vld [vmem:[#allocation3 + $0x38] sm:$0xff] }
  0x34   :  { %289 = vmatpush1.msra.mxu1 %v1787_v19  ;;  %185 = vmatprep.mubr.f32.mxu0 %v1713_v0  ;;  %v78_v36 = vld [vmem:[%s2181_s2] sm:$0x3]  ;;  %s1714_s2 = smov 64  }
  0x35   :  { %290 = vmatprep.subr.mxu1 %v1790_v20  ;;  %563 = vmatprep.subr.mxu0 %v1762_v2  ;;  %v87_v38 = vrot.slane %v78_v36, %v86_v35  ;;  %v83_v41 = vrot.slane %v78_v36, %v82_v37 }
  0x36   :  { %291 = vmatpush1.msra.mxu1 %v1794_v21  ;;  %564 = vmatpush1.msra.mxu0 %v1765_v4 }
  0x37   :  { %1428 = vmatmul.mubr.msk.f32.gmra.mxu0 %vm90_vm0, %v63_v22  ;;  %292 = vmatprep.subr.mxu1 %v1798_v23 }
  0x38   :  { %293 = vmatpush1.msra.mxu1 %v1801_v24  ;;  %191 = vmatprep.mubr.f32.mxu0 %v1713_v0 }
  0x39   :  { %294 = vmatprep.subr.mxu1 %v1805_v25  ;;  %565 = vmatprep.subr.mxu0 %v1767_v6 }
  0x3a   :  { %295 = vmatpush1.msra.mxu1 %v1810_v26  ;;  %566 = vmatpush1.msra.mxu0 %v1770_v8 }
  0x3b   :  { %1429 = vmatmul.mubr.msk.f32.gmra.mxu0 %vm90_vm0, %v64_v27  ;;  %329 = vmatmul.mubr.f32.vlgmr.msra.gmra.mxu1 %v1713_v0 }
  0x3c   :  { %197 = vmatprep.mubr.f32.mxu0 %v1713_v0  ;;  %420 = vmatprep.subr.mxu1 %v1762_v2 }
  0x3d   :  { %421 = vmatpush1.msra.mxu1 %v1765_v4  ;;  %468 = vmatprep.mubr.f32.mxu1 %v1713_v0 }
  0x3e   :  { %422 = vmatprep.subr.mxu1 %v1767_v6  ;;  %567 = vmatprep.subr.mxu0 %v1773_v10 }
  0x3f   :  { %1430 = vmatmul.mubr.msk.f32.gmra.mxu0 %vm90_vm0, %v65_v28  ;;  %423 = vmatpush1.msra.mxu1 %v1770_v8 }
  0x40   :  { %203 = vmatprep.mubr.f32.mxu0 %v1713_v0  ;;  %424 = vmatprep.subr.mxu1 %v1773_v10 }
  0x41   :  { %425 = vmatpush1.msra.mxu1 %v1775_v12  ;;  %568 = vmatpush1.msra.mxu0 %v1775_v12 }
  0x42   :  { %426 = vmatprep.subr.mxu1 %v1778_v14  ;;  %569 = vmatprep.subr.mxu0 %v1778_v14 }
  0x43   :  { %1431 = vmatmul.mubr.msk.f32.gmra.mxu0 %vm90_vm0, %v66_v29  ;;  %427 = vmatpush1.msra.mxu1 %v1781_v16 }
  0x44   :  { %209 = vmatprep.mubr.f32.mxu0 %v1713_v0  ;;  %428 = vmatprep.subr.mxu1 %v1784_v18 }
  0x45   :  { %429 = vmatpush1.msra.mxu1 %v1787_v19  ;;  %570 = vmatpush1.msra.mxu0 %v1781_v16 }
  0x46   :  { %430 = vmatprep.subr.mxu1 %v1790_v20  ;;  %571 = vmatprep.subr.mxu0 %v1784_v18 }
  0x47   :  { %1432 = vmatmul.mubr.msk.f32.gmra.mxu0 %vm90_vm0, %v67_v30  ;;  %431 = vmatpush1.msra.mxu1 %v1794_v21 }
  0x48   :  { %215 = vmatprep.mubr.f32.mxu0 %v1713_v0  ;;  %432 = vmatprep.subr.mxu1 %v1798_v23 }
  0x49   :  { %433 = vmatpush1.msra.mxu1 %v1801_v24  ;;  %572 = vmatpush1.msra.mxu0 %v1787_v19 }
  0x4a   :  { %434 = vmatprep.subr.mxu1 %v1805_v25  ;;  %573 = vmatprep.subr.mxu0 %v1790_v20 }
  0x4b   :  { %1433 = vmatmul.mubr.msk.f32.gmra.mxu0 %vm90_vm0, %v68_v31  ;;  %435 = vmatpush1.msra.mxu1 %v1810_v26 }
  0x4c   :  { %221 = vmatprep.mubr.f32.mxu0 %v1713_v0  ;;  %574 = vmatpush1.msra.mxu0 %v1794_v21 }
  0x4d   :  { %575 = vmatprep.subr.mxu0 %v1798_v23  ;;  %706 = vmatprep.subr.mxu1 %v1762_v2 }
  0x4e   :  { %576 = vmatpush1.msra.mxu0 %v1801_v24 }
  0x4f   :  { %1434 = vmatmul.mubr.msk.f32.gmra.mxu0 %vm90_vm0, %v69_v32  ;;  %577 = vmatprep.subr.mxu0 %v1805_v25 }
  0x50   :  { %578 = vmatpush1.msra.mxu0 %v1810_v26  ;;  %611 = vmatprep.mubr.f32.mxu0 %v1713_v0 }
  0x51   :  { %849 = vmatprep.subr.mxu0 %v1762_v2 }
  0xf3   :  { %v181_v39 = vpop.f32.mrf.mxu0 }
  0xf4   :  { %v182_v46 = vadd.f32 %v181_v39, %v83_v41 }
  0xf5   :  { %v183_v40 = vpop.f32.mrf.mxu0 }
  0xf6   :  { %v1865_v42 = vadd.f32 %v183_v40, %v87_v38 }
  0xf7   :  { %v187_v43 = vpop.f32.mrf.mxu0 }
  0xf8   :  { %v1867_v44 = vadd.f32 %v187_v43, %v83_v41 }
  0xf9   :  { %v189_v45 = vpop.f32.mrf.mxu0 }
  0xfa   :  { %v1869_v47 = vadd.f32 %v189_v45, %v87_v38 }
  0xfb   :  { %v193_v48 = vpop.f32.mrf.mxu0  ;;  %v330_v49 = vpop.f32.mrf.mxu1 }
  0xfc   :  { %v1871_v50 = vadd.f32 %v193_v48, %v83_v41  ;;  %v336_v51 = vadd.f32 %v330_v49, %v182_v46 }
  0xfd   :  { %v195_v52 = vpop.f32.mrf.mxu0  ;;  %v332_v28 = vpop.f32.mrf.mxu1 }
  0xfe   :  { %1470 = vtanh.f32 %v336_v51  ;;  %v1873_v53 = vadd.f32 %v195_v52, %v87_v38  ;;  %v1435_v31 = vmul.f32 -1.442695, %v336_v51 }
  0xff   :  { %v199_v54 = vpop.f32.mrf.mxu0 }
 0x100   :  { %v1875_v55 = vadd.f32 %v199_v54, %v83_v41 }
 0x101   :  { %v201_v56 = vpop.f32.mrf.mxu0 }
 0x102   :  { %v1877_v57 = vadd.f32 %v201_v56, %v87_v38 }
 0x103   :  { %v205_v58 = vpop.f32.mrf.mxu0 }
 0x104   :  { %v1879_v59 = vadd.f32 %v205_v58, %v83_v41 }
 0x105   :  { %v207_v60 = vpop.f32.mrf.mxu0 }
 0x106   :  { %v1881_v61 = vadd.f32 %v207_v60, %v87_v38 }
 0x107   :  { %v211_v62 = vpop.f32.mrf.mxu0 }
 0x108   :  { %v1883_v63 = vadd.f32 %v211_v62, %v83_v41 }
 0x109   :  { %v213_v1 = vpop.f32.mrf.mxu0 }
 0x10a   :  { %v1885_v3 = vadd.f32 %v213_v1, %v87_v38 }
 0x10b   :  { %v1471_v5 = vpop.eup %1470  ;;  %v217_v7 = vpop.f32.mrf.mxu0 }
 0x10c   :  { %v1887_v9 = vadd.f32 %v217_v7, %v83_v41  ;;  %349 = vrot.lane.b32.xlu0 %v1471_v5, %s1714_s2 }
 0x10d   :  { %v219_v11 = vpop.f32.mrf.mxu0 }
 0x10e   :  { %v1890_v13 = vadd.f32 %v219_v11, %v87_v38 }
 0x10f   :  { %v223_v15 = vpop.f32.mrf.mxu0 }
 0x110   :  { %v1892_v17 = vadd.f32 %v223_v15, %v83_v41 }
 0x111   :  { %v225_v22 = vpop.f32.mrf.mxu0 }
 0x112   :  { %v226_v27 = vadd.f32 %v225_v22, %v87_v38 }
 0x114   :  { %v339_v29 = vadd.f32 %v332_v28, %v226_v27 }
 0x116   :  { %1472 = vtanh.f32 %v339_v29  ;;  %v1436_v34 = vmul.f32 -1.442695, %v339_v29 }
 0x117   :  { %1474 = vpow2.f32 %v1435_v31 }
 0x123   :  { %v1473_v30 = vpop.eup %1472 }
 0x124   :  { %373 = vrot.lane.b32.xlu0 %v1473_v30, %s1714_s2  ;;  %v1475_v32 = vpop.eup %1474 }
 0x125   :  { %v343_v33 = vadd.f32 1.0, %v1475_v32 }
 0x127   :  { %1476 = vrcp.f32 %v343_v33 }
 0x128   :  { %1478 = vpow2.f32 %v1436_v34 }
 0x134   :  { %v1477_v35 = vpop.eup %1476 }
 0x135   :  { %v1479_v38 = vpop.eup %1478  ;;  %v347_v45 = vmul.f32 0.0, %v1477_v35 }
 0x136   :  { %v367_v39 = vadd.f32 1.0, %v1479_v38 }
 0x138   :  { %1480 = vrcp.f32 %v367_v39 }
 0x145   :  { %v1481_v40 = vpop.eup %1480 }
 0x146   :  { %v371_v51 = vmul.f32 0.0, %v1481_v40 }
 0x17e   :  { %v350_v36 = vpop.permute.xlu0 %349 }
 0x17f   :  { %v352_v37 = vmul.f32 %v1477_v35, %v350_v36 }
 0x181   :  { %354 = vrot.lane.b32.xlu1 %v352_v37, %s1715_s11 }
 0x196   :  { %v374_v41 = vpop.permute.xlu0 %373 }
 0x197   :  { %v376_v43 = vmul.f32 %v1481_v40, %v374_v41 }
 0x199   :  { %378 = vrot.lane.b32.xlu1 %v376_v43, %s1715_s11 }
 0x1f3   :  { %v355_v46 = vpop.permute.xlu1 %354 }
 0x1f4   :  { %v1897_v48 = vadd.f32 %v355_v46, %v347_v45 }
 0x1f6   :  { %1482 = vtanh.f32 %v1897_v48 }
 0x203   :  { %v1483_v49 = vpop.eup %1482 }
 0x204   :  { %360 = vrot.lane.b32.xlu0 %v1483_v49, %s1714_s2 }
 0x20b   :  { %v379_v52 = vpop.permute.xlu1 %378 }
 0x20c   :  { %v1901_v54 = vadd.f32 %v379_v52, %v371_v51 }
 0x20e   :  { %1484 = vtanh.f32 %v1901_v54 }
 0x21b   :  { %v1485_v56 = vpop.eup %1484 }
 0x21c   :  { %384 = vrot.lane.b32.xlu1 %v1485_v56, %s1714_s2 }
 0x276   :  { %v361_v58 = vpop.permute.xlu0 %360 }
 0x277   :  { %v1905_v60 = vmul.f32 %v1477_v35, %v361_v58 }
 0x279   :  { %389 = vrot.lane.b32.xlu0 %v1905_v60, %s1715_s11 }
 0x28e   :  { %v385_v62 = vpop.permute.xlu1 %384 }
 0x28f   :  { %v1909_v1 = vmul.f32 %v1481_v40, %v385_v62 }
 0x291   :  { %394 = vrot.lane.b32.xlu1 %v1909_v1, %s1714_s2 }
 0x2eb   :  { %v390_v5 = vpop.permute.xlu0 %389 }
 0x2ec   :  { %392 = vst.msk [vmem:[#allocation9] sm:$0xff] %vm90_vm0, %v390_v5 }
 0x303   :  { %v395_v7 = vpop.permute.xlu1 %394 }
 0x304   :  { %399 = vst.msk [vmem:[#allocation9 + $0x38] sm:$0xff] %vm398_vm1, %v395_v7  ;;  %v400_v11 = vsel %vm90_vm0, %v390_v5, %v395_v7 }
 0x305   :  { %1437 = vmatmul.mubr.msk.f32.vlgmr.msra.gmra.mxu1 %vm260_vm2, %v400_v11 }
 0x306   :  { %707 = vmatpush1.msra.mxu1 %v1765_v4  ;;  %754 = vmatprep.mubr.f32.mxu1 %v1713_v0 }
 0x307   :  { %708 = vmatprep.subr.mxu1 %v1767_v6 }
 0x308   :  { %709 = vmatpush1.msra.mxu1 %v1770_v8 }
 0x309   :  { %710 = vmatprep.subr.mxu1 %v1773_v10 }
 0x30a   :  { %711 = vmatpush1.msra.mxu1 %v1775_v12 }
 0x30b   :  { %712 = vmatprep.subr.mxu1 %v1778_v14 }
 0x30c   :  { %713 = vmatpush1.msra.mxu1 %v1781_v16 }
 0x30d   :  { %714 = vmatprep.subr.mxu1 %v1784_v18 }
 0x30e   :  { %715 = vmatpush1.msra.mxu1 %v1787_v19 }
 0x30f   :  { %716 = vmatprep.subr.mxu1 %v1790_v20 }
 0x310   :  { %717 = vmatpush1.msra.mxu1 %v1794_v21 }
 0x311   :  { %718 = vmatprep.subr.mxu1 %v1798_v23 }
 0x312   :  { %719 = vmatpush1.msra.mxu1 %v1801_v24 }
 0x313   :  { %720 = vmatprep.subr.mxu1 %v1805_v25 }
 0x314   :  { %721 = vmatpush1.msra.mxu1 %v1810_v26 }
 0x315   :  { %988 = vmatprep.subr.mxu1 %v1762_v2 }
 0x3c5   :  { %v470_v15 = vpop.f32.mrf.mxu1 }
 0x3c6   :  { %v477_v22 = vadd.f32 %v470_v15, %v1867_v44 }
 0x3c7   :  { %v472_v27 = vpop.f32.mrf.mxu1 }
 0x3c8   :  { %1486 = vtanh.f32 %v477_v22  ;;  %v480_v28 = vadd.f32 %v472_v27, %v1890_v13  ;;  %v1438_v31 = vmul.f32 -1.442695, %v477_v22 }
 0x3ca   :  { %1488 = vtanh.f32 %v480_v28  ;;  %v1439_v32 = vmul.f32 -1.442695, %v480_v28 }
 0x3cb   :  { %1490 = vpow2.f32 %v1438_v31 }
 0x3cc   :  { %1492 = vpow2.f32 %v1439_v32 }
 0x3d5   :  { %v1487_v29 = vpop.eup %1486 }
 0x3d6   :  { %490 = vrot.lane.b32.xlu0 %v1487_v29, %s1714_s2 }
 0x3d7   :  { %v1489_v30 = vpop.eup %1488 }
 0x3d8   :  { %514 = vrot.lane.b32.xlu1 %v1489_v30, %s1714_s2  ;;  %v1491_v33 = vpop.eup %1490 }
 0x3d9   :  { %v1493_v34 = vpop.eup %1492  ;;  %v484_v35 = vadd.f32 1.0, %v1491_v33 }
 0x3da   :  { %v508_v36 = vadd.f32 1.0, %v1493_v34 }
 0x3db   :  { %1494 = vrcp.f32 %v484_v35 }
 0x3dc   :  { %1496 = vrcp.f32 %v508_v36 }
 0x3e8   :  { %v1495_v44 = vpop.eup %1494 }
 0x3e9   :  { %v1497_v38 = vpop.eup %1496  ;;  %v488_v41 = vmul.f32 %v1495_v44, %v1897_v48 }
 0x3ea   :  { %v512_v46 = vmul.f32 %v1497_v38, %v1901_v54 }
 0x448   :  { %v491_v37 = vpop.permute.xlu0 %490 }
 0x449   :  { %v493_v13 = vmul.f32 %v1495_v44, %v491_v37 }
 0x44a   :  { %v515_v39 = vpop.permute.xlu1 %514 }
 0x44b   :  { %495 = vrot.lane.b32.xlu0 %v493_v13, %s1715_s11  ;;  %v517_v40 = vmul.f32 %v1497_v38, %v515_v39 }
 0x44d   :  { %519 = vrot.lane.b32.xlu1 %v517_v40, %s1715_s11 }
 0x4bd   :  { %v496_v43 = vpop.permute.xlu0 %495 }
 0x4be   :  { %v1941_v45 = vadd.f32 %v496_v43, %v488_v41 }
 0x4bf   :  { %v520_v49 = vpop.permute.xlu1 %519 }
 0x4c0   :  { %1498 = vtanh.f32 %v1941_v45  ;;  %v1945_v51 = vadd.f32 %v520_v49, %v512_v46 }
 0x4c2   :  { %1500 = vtanh.f32 %v1945_v51 }
 0x4cd   :  { %v1499_v52 = vpop.eup %1498 }
 0x4ce   :  { %501 = vrot.lane.b32.xlu0 %v1499_v52, %s1714_s2 }
 0x4cf   :  { %v1501_v56 = vpop.eup %1500 }
 0x4d0   :  { %525 = vrot.lane.b32.xlu1 %v1501_v56, %s1714_s2 }
 0x540   :  { %v502_v58 = vpop.permute.xlu0 %501 }
 0x541   :  { %v1950_v48 = vmul.f32 %v1495_v44, %v502_v58 }
 0x542   :  { %v526_v62 = vpop.permute.xlu1 %525 }
 0x543   :  { %530 = vrot.lane.b32.xlu0 %v1950_v48, %s1715_s11  ;;  %v1954_v54 = vmul.f32 %v1497_v38, %v526_v62 }
 0x545   :  { %536 = vrot.lane.b32.xlu1 %v1954_v54, %s1714_s2 }
 0x5b5   :  { %v531_v5 = vpop.permute.xlu0 %530 }
 0x5b6   :  { %534 = vst.msk [vmem:[#allocation9 + $0x8] sm:$0xff] %vm90_vm0, %v531_v5 }
 0x5b7   :  { %v537_v7 = vpop.permute.xlu1 %536 }
 0x5b8   :  { %540 = vst.msk [vmem:[#allocation9 + $0x30] sm:$0xff] %vm398_vm1, %v537_v7  ;;  %v543_v11 = vsel %vm90_vm0, %v531_v5, %v537_v7  ;;  %v542_v7 = vmax.f32 %v1909_v1, %v1954_v54 }
 0x5b9   :  { %1440 = vmatmul.mubr.msk.f32.vlgmr.msra.gmra.mxu0 %vm260_vm2, %v543_v11 }
 0x5ba   :  { %850 = vmatpush1.msra.mxu0 %v1765_v4  ;;  %897 = vmatprep.mubr.f32.mxu0 %v1713_v0 }
 0x5bb   :  { %851 = vmatprep.subr.mxu0 %v1767_v6 }
 0x5bc   :  { %852 = vmatpush1.msra.mxu0 %v1770_v8 }
 0x5bd   :  { %853 = vmatprep.subr.mxu0 %v1773_v10 }
 0x5be   :  { %854 = vmatpush1.msra.mxu0 %v1775_v12 }
 0x5bf   :  { %855 = vmatprep.subr.mxu0 %v1778_v14 }
 0x5c0   :  { %856 = vmatpush1.msra.mxu0 %v1781_v16 }
 0x5c1   :  { %857 = vmatprep.subr.mxu0 %v1784_v18 }
 0x5c2   :  { %858 = vmatpush1.msra.mxu0 %v1787_v19 }
 0x5c3   :  { %859 = vmatprep.subr.mxu0 %v1790_v20 }
 0x5c4   :  { %860 = vmatpush1.msra.mxu0 %v1794_v21 }
 0x5c5   :  { %861 = vmatprep.subr.mxu0 %v1798_v23 }
 0x5c6   :  { %862 = vmatpush1.msra.mxu0 %v1801_v24 }
 0x5c7   :  { %863 = vmatprep.subr.mxu0 %v1805_v25 }
 0x5c8   :  { %864 = vmatpush1.msra.mxu0 %v1810_v26 }
 0x5c9   :  { %1127 = vmatprep.subr.mxu0 %v1762_v2 }
 0x679   :  { %v613_v15 = vpop.f32.mrf.mxu0 }
 0x67a   :  { %v620_v22 = vadd.f32 %v613_v15, %v1871_v50 }
 0x67b   :  { %v615_v27 = vpop.f32.mrf.mxu0 }
 0x67c   :  { %1502 = vtanh.f32 %v620_v22  ;;  %v623_v28 = vadd.f32 %v615_v27, %v1885_v3  ;;  %v1441_v31 = vmul.f32 -1.442695, %v620_v22 }
 0x67e   :  { %1504 = vtanh.f32 %v623_v28  ;;  %v1442_v32 = vmul.f32 -1.442695, %v623_v28 }
 0x67f   :  { %1506 = vpow2.f32 %v1441_v31 }
 0x680   :  { %1508 = vpow2.f32 %v1442_v32 }
 0x689   :  { %v1503_v29 = vpop.eup %1502 }
 0x68a   :  { %633 = vrot.lane.b32.xlu0 %v1503_v29, %s1714_s2 }
 0x68b   :  { %v1505_v30 = vpop.eup %1504 }
 0x68c   :  { %657 = vrot.lane.b32.xlu1 %v1505_v30, %s1714_s2  ;;  %v1507_v33 = vpop.eup %1506 }
 0x68d   :  { %v1509_v34 = vpop.eup %1508  ;;  %v627_v35 = vadd.f32 1.0, %v1507_v33 }
 0x68e   :  { %v651_v36 = vadd.f32 1.0, %v1509_v34 }
 0x68f   :  { %1510 = vrcp.f32 %v627_v35 }
 0x690   :  { %1512 = vrcp.f32 %v651_v36 }
 0x69c   :  { %v1511_v50 = vpop.eup %1510 }
 0x69d   :  { %v1513_v37 = vpop.eup %1512  ;;  %v631_v39 = vmul.f32 %v1511_v50, %v1941_v45  ;;  %v541_v45 = vmax.f32 %v1905_v60, %v1950_v48 }
 0x69e   :  { %v655_v43 = vmul.f32 %v1513_v37, %v1945_v51 }
 0x6fc   :  { %v634_v44 = vpop.permute.xlu0 %633 }
 0x6fd   :  { %v636_v3 = vmul.f32 %v1511_v50, %v634_v44 }
 0x6fe   :  { %v658_v13 = vpop.permute.xlu1 %657 }
 0x6ff   :  { %638 = vrot.lane.b32.xlu0 %v636_v3, %s1715_s11  ;;  %v660_v38 = vmul.f32 %v1513_v37, %v658_v13 }
 0x701   :  { %662 = vrot.lane.b32.xlu1 %v660_v38, %s1715_s11 }
 0x771   :  { %v639_v40 = vpop.permute.xlu0 %638 }
 0x772   :  { %v1986_v41 = vadd.f32 %v639_v40, %v631_v39 }
 0x773   :  { %v663_v46 = vpop.permute.xlu1 %662 }
 0x774   :  { %1514 = vtanh.f32 %v1986_v41  ;;  %v1990_v49 = vadd.f32 %v663_v46, %v655_v43 }
 0x776   :  { %1516 = vtanh.f32 %v1990_v49 }
 0x781   :  { %v1515_v52 = vpop.eup %1514 }
 0x782   :  { %644 = vrot.lane.b32.xlu0 %v1515_v52, %s1714_s2 }
 0x783   :  { %v1517_v56 = vpop.eup %1516 }
 0x784   :  { %668 = vrot.lane.b32.xlu1 %v1517_v56, %s1714_s2 }
 0x7f4   :  { %v645_v58 = vpop.permute.xlu0 %644 }
 0x7f5   :  { %v647_v62 = vmul.f32 %v1511_v50, %v645_v58 }
 0x7f6   :  { %v669_v51 = vpop.permute.xlu1 %668 }
 0x7f7   :  { %v1997_v5 = vmax.f32 %v541_v45, %v647_v62  ;;  %673 = vrot.lane.b32.xlu0 %v647_v62, %s1715_s11  ;;  %v671_v11 = vmul.f32 %v1513_v37, %v669_v51 }
 0x7f9   :  { %v2002_v15 = vmax.f32 %v542_v7, %v671_v11  ;;  %679 = vrot.lane.b32.xlu1 %v671_v11, %s1714_s2 }
 0x869   :  { %v674_v22 = vpop.permute.xlu0 %673 }
 0x86a   :  { %677 = vst.msk [vmem:[#allocation9 + $0x10] sm:$0xff] %vm90_vm0, %v674_v22 }
 0x86b   :  { %v680_v27 = vpop.permute.xlu1 %679 }
 0x86c   :  { %683 = vst.msk [vmem:[#allocation9 + $0x28] sm:$0xff] %vm398_vm1, %v680_v27  ;;  %v686_v60 = vsel %vm90_vm0, %v674_v22, %v680_v27 }
 0x86d   :  { %1443 = vmatmul.mubr.msk.f32.vlgmr.msra.gmra.mxu1 %vm260_vm2, %v686_v60 }
 0x86e   :  { %989 = vmatpush1.msra.mxu1 %v1765_v4  ;;  %1036 = vmatprep.mubr.f32.mxu1 %v1713_v0 }
 0x86f   :  { %990 = vmatprep.subr.mxu1 %v1767_v6 }
 0x870   :  { %991 = vmatpush1.msra.mxu1 %v1770_v8 }
 0x871   :  { %992 = vmatprep.subr.mxu1 %v1773_v10 }
 0x872   :  { %993 = vmatpush1.msra.mxu1 %v1775_v12 }
 0x873   :  { %994 = vmatprep.subr.mxu1 %v1778_v14 }
 0x874   :  { %995 = vmatpush1.msra.mxu1 %v1781_v16 }
 0x875   :  { %996 = vmatprep.subr.mxu1 %v1784_v18 }
 0x876   :  { %997 = vmatpush1.msra.mxu1 %v1787_v19 }
 0x877   :  { %998 = vmatprep.subr.mxu1 %v1790_v20 }
 0x878   :  { %999 = vmatpush1.msra.mxu1 %v1794_v21 }
 0x879   :  { %1000 = vmatprep.subr.mxu1 %v1798_v23 }
 0x87a   :  { %1001 = vmatpush1.msra.mxu1 %v1801_v24 }
 0x87b   :  { %1002 = vmatprep.subr.mxu1 %v1805_v25 }
 0x87c   :  { %1003 = vmatpush1.msra.mxu1 %v1810_v26 }
 0x87d   :  { %1266 = vmatprep.subr.mxu1 %v1762_v2 }
 0x92d   :  { %v756_v1 = vpop.f32.mrf.mxu1 }
 0x92e   :  { %v763_v48 = vadd.f32 %v756_v1, %v1875_v55 }
 0x92f   :  { %v758_v54 = vpop.f32.mrf.mxu1 }
 0x930   :  { %1518 = vtanh.f32 %v763_v48  ;;  %v766_v28 = vadd.f32 %v758_v54, %v1881_v61  ;;  %v1444_v31 = vmul.f32 -1.442695, %v763_v48 }
 0x932   :  { %1520 = vtanh.f32 %v766_v28  ;;  %v1445_v32 = vmul.f32 -1.442695, %v766_v28 }
 0x933   :  { %1522 = vpow2.f32 %v1444_v31 }
 0x934   :  { %1524 = vpow2.f32 %v1445_v32 }
 0x93d   :  { %v1519_v29 = vpop.eup %1518 }
 0x93e   :  { %776 = vrot.lane.b32.xlu0 %v1519_v29, %s1714_s2 }
 0x93f   :  { %v1521_v30 = vpop.eup %1520 }
 0x940   :  { %800 = vrot.lane.b32.xlu1 %v1521_v30, %s1714_s2  ;;  %v1523_v33 = vpop.eup %1522 }
 0x941   :  { %v1525_v2 = vpop.eup %1524  ;;  %v770_v34 = vadd.f32 1.0, %v1523_v33 }
 0x942   :  { %v794_v35 = vadd.f32 1.0, %v1525_v2 }
 0x943   :  { %1526 = vrcp.f32 %v770_v34 }
 0x944   :  { %1528 = vrcp.f32 %v794_v35 }
 0x950   :  { %v1527_v55 = vpop.eup %1526 }
 0x951   :  { %v1529_v50 = vpop.eup %1528  ;;  %v774_v37 = vmul.f32 %v1527_v55, %v1986_v41 }
 0x952   :  { %v798_v39 = vmul.f32 %v1529_v50, %v1990_v49 }
 0x9b0   :  { %v777_v36 = vpop.permute.xlu0 %776 }
 0x9b1   :  { %v779_v61 = vmul.f32 %v1527_v55, %v777_v36 }
 0x9b2   :  { %v801_v44 = vpop.permute.xlu1 %800 }
 0x9b3   :  { %781 = vrot.lane.b32.xlu0 %v779_v61, %s1715_s11  ;;  %v803_v3 = vmul.f32 %v1529_v50, %v801_v44 }
 0x9b5   :  { %805 = vrot.lane.b32.xlu1 %v803_v3, %s1715_s11 }
 0xa25   :  { %v782_v13 = vpop.permute.xlu0 %781 }
 0xa26   :  { %v2033_v38 = vadd.f32 %v782_v13, %v774_v37 }
 0xa27   :  { %v806_v40 = vpop.permute.xlu1 %805 }
 0xa28   :  { %1530 = vtanh.f32 %v2033_v38  ;;  %v2037_v43 = vadd.f32 %v806_v40, %v798_v39 }
 0xa2a   :  { %1532 = vtanh.f32 %v2037_v43 }
 0xa35   :  { %v1531_v46 = vpop.eup %1530 }
 0xa36   :  { %787 = vrot.lane.b32.xlu0 %v1531_v46, %s1714_s2 }
 0xa37   :  { %v1533_v52 = vpop.eup %1532 }
 0xa38   :  { %811 = vrot.lane.b32.xlu1 %v1533_v52, %s1714_s2 }
 0xaa8   :  { %v788_v56 = vpop.permute.xlu0 %787 }
 0xaa9   :  { %v2042_v41 = vmul.f32 %v1527_v55, %v788_v56 }
 0xaaa   :  { %v812_v49 = vpop.permute.xlu1 %811 }
 0xaab   :  { %v827_v58 = vmax.f32 %v1997_v5, %v2042_v41  ;;  %816 = vrot.lane.b32.xlu0 %v2042_v41, %s1715_s11  ;;  %v2048_v45 = vmul.f32 %v1529_v50, %v812_v49 }
 0xaad   :  { %v828_v62 = vmax.f32 %v2002_v15, %v2048_v45  ;;  %822 = vrot.lane.b32.xlu1 %v2048_v45, %s1714_s2 }
 0xb1d   :  { %v817_v51 = vpop.permute.xlu0 %816 }
 0xb1e   :  { %820 = vst.msk [vmem:[#allocation9 + $0x18] sm:$0xff] %vm90_vm0, %v817_v51 }
 0xb1f   :  { %v823_v7 = vpop.permute.xlu1 %822 }
 0xb20   :  { %826 = vst.msk [vmem:[#allocation9 + $0x20] sm:$0xff] %vm398_vm1, %v823_v7  ;;  %v829_v11 = vsel %vm90_vm0, %v817_v51, %v823_v7 }
 0xb21   :  { %1446 = vmatmul.mubr.msk.f32.vlgmr.msra.gmra.mxu0 %vm260_vm2, %v829_v11 }
 0xb22   :  { %1128 = vmatpush1.msra.mxu0 %v1765_v4  ;;  %1175 = vmatprep.mubr.f32.mxu0 %v1713_v0 }
 0xb23   :  { %1129 = vmatprep.subr.mxu0 %v1767_v6 }
 0xb24   :  { %1130 = vmatpush1.msra.mxu0 %v1770_v8 }
 0xb25   :  { %1131 = vmatprep.subr.mxu0 %v1773_v10 }
 0xb26   :  { %1132 = vmatpush1.msra.mxu0 %v1775_v12 }
 0xb27   :  { %1133 = vmatprep.subr.mxu0 %v1778_v14 }
 0xb28   :  { %1134 = vmatpush1.msra.mxu0 %v1781_v16 }
 0xb29   :  { %1135 = vmatprep.subr.mxu0 %v1784_v18 }
 0xb2a   :  { %1136 = vmatpush1.msra.mxu0 %v1787_v19 }
 0xb2b   :  { %1137 = vmatprep.subr.mxu0 %v1790_v20 }
 0xb2c   :  { %1138 = vmatpush1.msra.mxu0 %v1794_v21 }
 0xb2d   :  { %1139 = vmatprep.subr.mxu0 %v1798_v23 }
 0xb2e   :  { %1140 = vmatpush1.msra.mxu0 %v1801_v24 }
 0xb2f   :  { %1141 = vmatprep.subr.mxu0 %v1805_v25 }
 0xb30   :  { %1142 = vmatpush1.msra.mxu0 %v1810_v26 }
 0xbe1   :  { %v899_v22 = vpop.f32.mrf.mxu0 }
 0xbe2   :  { %v905_v27 = vadd.f32 %v899_v22, %v1879_v59 }
 0xbe3   :  { %v901_v60 = vpop.f32.mrf.mxu0 }
 0xbe4   :  { %1534 = vtanh.f32 %v905_v27  ;;  %v907_v1 = vadd.f32 %v901_v60, %v1877_v57  ;;  %v1447_v28 = vmul.f32 -1.442695, %v905_v27 }
 0xbe6   :  { %1536 = vtanh.f32 %v907_v1  ;;  %v1448_v29 = vmul.f32 -1.442695, %v907_v1 }
 0xbe7   :  { %1538 = vpow2.f32 %v1447_v28 }
 0xbe8   :  { %1540 = vpow2.f32 %v1448_v29 }
 0xbf1   :  { %v1535_v48 = vpop.eup %1534 }
 0xbf2   :  { %917 = vrot.lane.b32.xlu0 %v1535_v48, %s1714_s2 }
 0xbf3   :  { %v1537_v54 = vpop.eup %1536 }
 0xbf4   :  { %941 = vrot.lane.b32.xlu1 %v1537_v54, %s1714_s2  ;;  %v1539_v30 = vpop.eup %1538 }
 0xbf5   :  { %v1541_v31 = vpop.eup %1540  ;;  %v911_v32 = vadd.f32 1.0, %v1539_v30 }
 0xbf6   :  { %v935_v33 = vadd.f32 1.0, %v1541_v31 }
 0xbf7   :  { %1542 = vrcp.f32 %v911_v32 }
 0xbf8   :  { %1544 = vrcp.f32 %v935_v33 }
 0xc04   :  { %v1543_v59 = vpop.eup %1542 }
 0xc05   :  { %v1545_v34 = vpop.eup %1544  ;;  %v915_v36 = vmul.f32 %v1543_v59, %v2033_v38 }
 0xc06   :  { %v939_v44 = vmul.f32 %v1545_v34, %v2037_v43 }
 0xc64   :  { %v918_v2 = vpop.permute.xlu0 %917 }
 0xc65   :  { %v920_v57 = vmul.f32 %v1543_v59, %v918_v2 }
 0xc66   :  { %v942_v35 = vpop.permute.xlu1 %941 }
 0xc67   :  { %922 = vrot.lane.b32.xlu0 %v920_v57, %s1715_s11  ;;  %v944_v55 = vmul.f32 %v1545_v34, %v942_v35 }
 0xc69   :  { %946 = vrot.lane.b32.xlu1 %v944_v55, %s1715_s11 }
 0xcd9   :  { %v923_v61 = vpop.permute.xlu0 %922 }
 0xcda   :  { %v2081_v50 = vadd.f32 %v923_v61, %v915_v36 }
 0xcdb   :  { %v947_v3 = vpop.permute.xlu1 %946 }
 0xcdc   :  { %1546 = vtanh.f32 %v2081_v50  ;;  %v2085_v37 = vadd.f32 %v947_v3, %v939_v44 }
 0xcde   :  { %1548 = vtanh.f32 %v2085_v37 }
 0xce9   :  { %v1547_v13 = vpop.eup %1546 }
 0xcea   :  { %928 = vrot.lane.b32.xlu0 %v1547_v13, %s1714_s2 }
 0xceb   :  { %v1549_v39 = vpop.eup %1548 }
 0xcec   :  { %952 = vrot.lane.b32.xlu1 %v1549_v39, %s1714_s2 }
 0xd5c   :  { %v929_v40 = vpop.permute.xlu0 %928 }
 0xd5d   :  { %v931_v38 = vmul.f32 %v1543_v59, %v929_v40 }
 0xd5e   :  { %v953_v43 = vpop.permute.xlu1 %952 }
 0xd5f   :  { %v2093_v46 = vmax.f32 %v827_v58, %v931_v38  ;;  %957 = vrot.lane.b32.xlu0 %v931_v38, %s1715_s11  ;;  %v955_v52 = vmul.f32 %v1545_v34, %v953_v43 }
 0xd61   :  { %v2099_v56 = vmax.f32 %v828_v62, %v955_v52  ;;  %962 = vrot.lane.b32.xlu1 %v955_v52, %s1714_s2 }
 0xdd1   :  { %v958_v49 = vpop.permute.xlu0 %957 }
 0xdd2   :  { %960 = vst.msk [vmem:[#allocation9 + $0x20] sm:$0xff] %vm90_vm0, %v958_v49 }
 0xdd3   :  { %v963_v51 = vpop.permute.xlu1 %962 }
 0xdd4   :  { %965 = vst.msk [vmem:[#allocation9 + $0x18] sm:$0xff] %vm398_vm1, %v963_v51  ;;  %v968_v5 = vsel %vm90_vm0, %v958_v49, %v963_v51 }
 0xdd5   :  { %1449 = vmatmul.mubr.msk.f32.vlgmr.msra.gmra.mxu1 %vm260_vm2, %v968_v5 }
 0xdd6   :  { %1267 = vmatpush1.msra.mxu1 %v1765_v4  ;;  %1314 = vmatprep.mubr.f32.mxu1 %v1713_v0 }
 0xdd7   :  { %1268 = vmatprep.subr.mxu1 %v1767_v6 }
 0xdd8   :  { %1269 = vmatpush1.msra.mxu1 %v1770_v8 }
 0xdd9   :  { %1270 = vmatprep.subr.mxu1 %v1773_v10 }
 0xdda   :  { %1271 = vmatpush1.msra.mxu1 %v1775_v12 }
 0xddb   :  { %1272 = vmatprep.subr.mxu1 %v1778_v14 }
 0xddc   :  { %1273 = vmatpush1.msra.mxu1 %v1781_v16 }
 0xddd   :  { %1274 = vmatprep.subr.mxu1 %v1784_v18 }
 0xdde   :  { %1275 = vmatpush1.msra.mxu1 %v1787_v19 }
 0xddf   :  { %1276 = vmatprep.subr.mxu1 %v1790_v20 }
 0xde0   :  { %1277 = vmatpush1.msra.mxu1 %v1794_v21 }
 0xde1   :  { %1278 = vmatprep.subr.mxu1 %v1798_v23 }
 0xde2   :  { %1279 = vmatpush1.msra.mxu1 %v1801_v24 }
 0xde3   :  { %1280 = vmatprep.subr.mxu1 %v1805_v25 }
 0xde4   :  { %1281 = vmatpush1.msra.mxu1 %v1810_v26 }
 0xe95   :  { %v1038_v0 = vpop.f32.mrf.mxu1 }
 0xe96   :  { %v1044_v4 = vadd.f32 %v1038_v0, %v1883_v63 }
 0xe97   :  { %v1040_v6 = vpop.f32.mrf.mxu1 }
 0xe98   :  { %1550 = vtanh.f32 %v1044_v4  ;;  %v1046_v8 = vadd.f32 %v1040_v6, %v1873_v53  ;;  %v1450_v14 = vmul.f32 -1.442695, %v1044_v4 }
 0xe9a   :  { %1552 = vtanh.f32 %v1046_v8  ;;  %v1451_v16 = vmul.f32 -1.442695, %v1046_v8 }
 0xe9b   :  { %1554 = vpow2.f32 %v1450_v14 }
 0xe9c   :  { %1556 = vpow2.f32 %v1451_v16 }
 0xea5   :  { %v1551_v10 = vpop.eup %1550 }
 0xea6   :  { %1056 = vrot.lane.b32.xlu0 %v1551_v10, %s1714_s2 }
 0xea7   :  { %v1553_v12 = vpop.eup %1552 }
 0xea8   :  { %1080 = vrot.lane.b32.xlu1 %v1553_v12, %s1714_s2  ;;  %v1555_v18 = vpop.eup %1554 }
 0xea9   :  { %v1557_v19 = vpop.eup %1556  ;;  %v1050_v20 = vadd.f32 1.0, %v1555_v18 }
 0xeaa   :  { %v1074_v21 = vadd.f32 1.0, %v1557_v19 }
 0xeab   :  { %1558 = vrcp.f32 %v1050_v20 }
 0xeac   :  { %1560 = vrcp.f32 %v1074_v21 }
 0xeb8   :  { %v1559_v23 = vpop.eup %1558 }
 0xeb9   :  { %v1561_v26 = vpop.eup %1560  ;;  %v1054_v15 = vmul.f32 %v1559_v23, %v2081_v50 }
 0xeba   :  { %v1078_v45 = vmul.f32 %v1561_v26, %v2085_v37 }
 0xf18   :  { %v1057_v24 = vpop.permute.xlu0 %1056 }
 0xf19   :  { %v1059_v25 = vmul.f32 %v1559_v23, %v1057_v24 }
 0xf1a   :  { %v1081_v53 = vpop.permute.xlu1 %1080 }
 0xf1b   :  { %1061 = vrot.lane.b32.xlu0 %v1059_v25, %s1715_s11  ;;  %v1083_v63 = vmul.f32 %v1561_v26, %v1081_v53 }
 0xf1d   :  { %1085 = vrot.lane.b32.xlu1 %v1083_v63, %s1715_s11 }
 0xf8d   :  { %v1062_v41 = vpop.permute.xlu0 %1061 }
 0xf8e   :  { %v1064_v58 = vadd.f32 %v1062_v41, %v1054_v15 }
 0xf8f   :  { %v1086_v62 = vpop.permute.xlu1 %1085 }
 0xf90   :  { %1562 = vtanh.f32 %v1064_v58  ;;  %v1088_v7 = vadd.f32 %v1086_v62, %v1078_v45 }
 0xf92   :  { %1564 = vtanh.f32 %v1088_v7 }
 0xf9d   :  { %v1563_v11 = vpop.eup %1562 }
 0xf9e   :  { %1067 = vrot.lane.b32.xlu0 %v1563_v11, %s1714_s2 }
 0xf9f   :  { %v1565_v22 = vpop.eup %1564 }
 0xfa0   :  { %1091 = vrot.lane.b32.xlu1 %v1565_v22, %s1714_s2 }
0x1010   :  { %v1068_v27 = vpop.permute.xlu0 %1067 }
0x1011   :  { %v1070_v60 = vmul.f32 %v1559_v23, %v1068_v27 }
0x1012   :  { %v1092_v48 = vpop.permute.xlu1 %1091 }
0x1013   :  { %v1105_v1 = vmax.f32 %v2093_v46, %v1070_v60  ;;  %1096 = vrot.lane.b32.xlu0 %v1070_v60, %s1715_s11  ;;  %v1094_v54 = vmul.f32 %v1561_v26, %v1092_v48 }
0x1015   :  { %v1106_v28 = vmax.f32 %v2099_v56, %v1094_v54  ;;  %1101 = vrot.lane.b32.xlu1 %v1094_v54, %s1714_s2 }
0x1085   :  { %v1097_v29 = vpop.permute.xlu0 %1096 }
0x1086   :  { %1099 = vst.msk [vmem:[#allocation9 + $0x28] sm:$0xff] %vm90_vm0, %v1097_v29 }
0x1087   :  { %v1102_v30 = vpop.permute.xlu1 %1101 }
0x1088   :  { %1104 = vst.msk [vmem:[#allocation9 + $0x10] sm:$0xff] %vm398_vm1, %v1102_v30  ;;  %v1107_v31 = vsel %vm90_vm0, %v1097_v29, %v1102_v30 }
0x1089   :  { %1452 = vmatmul.mubr.msk.f32.vlgmr.msra.gmra.mxu0 %vm260_vm2, %v1107_v31 }
0x1149   :  { %v1177_v32 = vpop.f32.mrf.mxu0 }
0x114a   :  { %v1183_v33 = vadd.f32 %v1177_v32, %v1887_v9 }
0x114b   :  { %v1179_v59 = vpop.f32.mrf.mxu0 }
0x114c   :  { %1566 = vtanh.f32 %v1183_v33  ;;  %v1185_v2 = vadd.f32 %v1179_v59, %v1869_v47  ;;  %v1453_v35 = vmul.f32 -1.442695, %v1183_v33 }
0x114e   :  { %1568 = vtanh.f32 %v1185_v2  ;;  %v1454_v55 = vmul.f32 -1.442695, %v1185_v2 }
0x114f   :  { %1570 = vpow2.f32 %v1453_v35 }
0x1150   :  { %1572 = vpow2.f32 %v1454_v55 }
0x1159   :  { %v1567_v57 = vpop.eup %1566 }
0x115a   :  { %1195 = vrot.lane.b32.xlu0 %v1567_v57, %s1714_s2 }
0x115b   :  { %v1569_v34 = vpop.eup %1568 }
0x115c   :  { %1219 = vrot.lane.b32.xlu1 %v1569_v34, %s1714_s2  ;;  %v1571_v36 = vpop.eup %1570 }
0x115d   :  { %v1573_v61 = vpop.eup %1572  ;;  %v1189_v50 = vadd.f32 1.0, %v1571_v36 }
0x115e   :  { %v1213_v44 = vadd.f32 1.0, %v1573_v61 }
0x115f   :  { %1574 = vrcp.f32 %v1189_v50 }
0x1160   :  { %1576 = vrcp.f32 %v1213_v44 }
0x116c   :  { %v1575_v9 = vpop.eup %1574 }
0x116d   :  { %v1577_v37 = vpop.eup %1576  ;;  %v1193_v40 = vmul.f32 %v1575_v9, %v1064_v58 }
0x116e   :  { %v1217_v43 = vmul.f32 %v1577_v37, %v1088_v7 }
0x11cc   :  { %v1196_v3 = vpop.permute.xlu0 %1195 }
0x11cd   :  { %v1198_v47 = vmul.f32 %v1575_v9, %v1196_v3 }
0x11ce   :  { %v1220_v13 = vpop.permute.xlu1 %1219 }
0x11cf   :  { %1200 = vrot.lane.b32.xlu0 %v1198_v47, %s1715_s11  ;;  %v1222_v39 = vmul.f32 %v1577_v37, %v1220_v13 }
0x11d1   :  { %1224 = vrot.lane.b32.xlu1 %v1222_v39, %s1715_s11 }
0x1241   :  { %v1201_v38 = vpop.permute.xlu0 %1200 }
0x1242   :  { %v1203_v46 = vadd.f32 %v1201_v38, %v1193_v40 }
0x1243   :  { %v1225_v52 = vpop.permute.xlu1 %1224 }
0x1244   :  { %1578 = vtanh.f32 %v1203_v46  ;;  %v1227_v56 = vadd.f32 %v1225_v52, %v1217_v43 }
0x1246   :  { %1580 = vtanh.f32 %v1227_v56 }
0x1251   :  { %v1579_v49 = vpop.eup %1578 }
0x1252   :  { %1206 = vrot.lane.b32.xlu0 %v1579_v49, %s1714_s2 }
0x1253   :  { %v1581_v51 = vpop.eup %1580 }
0x1254   :  { %1230 = vrot.lane.b32.xlu1 %v1581_v51, %s1714_s2 }
0x12c4   :  { %v1207_v5 = vpop.permute.xlu0 %1206 }
0x12c5   :  { %v1209_v0 = vmul.f32 %v1575_v9, %v1207_v5 }
0x12c6   :  { %v1231_v6 = vpop.permute.xlu1 %1230 }
0x12c7   :  { %v1244_v4 = vmax.f32 %v1105_v1, %v1209_v0  ;;  %1235 = vrot.lane.b32.xlu0 %v1209_v0, %s1715_s11  ;;  %v1233_v8 = vmul.f32 %v1577_v37, %v1231_v6 }
0x12c9   :  { %v1245_v10 = vmax.f32 %v1106_v28, %v1233_v8  ;;  %1240 = vrot.lane.b32.xlu1 %v1233_v8, %s1714_s2 }
0x1339   :  { %v1236_v12 = vpop.permute.xlu0 %1235 }
0x133a   :  { %1238 = vst.msk [vmem:[#allocation9 + $0x30] sm:$0xff] %vm90_vm0, %v1236_v12 }
0x133b   :  { %v1241_v14 = vpop.permute.xlu1 %1240 }
0x133c   :  { %1243 = vst.msk [vmem:[#allocation9 + $0x8] sm:$0xff] %vm398_vm1, %v1241_v14  ;;  %v1246_v16 = vsel %vm90_vm0, %v1236_v12, %v1241_v14 }
0x133d   :  { %1455 = vmatmul.mubr.msk.f32.vlgmr.msra.gmra.mxu1 %vm260_vm2, %v1246_v16 }
0x13fd   :  { %v1316_v18 = vpop.f32.mrf.mxu1 }
0x13fe   :  { %v1322_v19 = vadd.f32 %v1316_v18, %v1892_v17 }
0x13ff   :  { %v1318_v20 = vpop.f32.mrf.mxu1 }
0x1400   :  { %1582 = vtanh.f32 %v1322_v19  ;;  %v1324_v21 = vadd.f32 %v1318_v20, %v1865_v42  ;;  %v1456_v25 = vmul.f32 -1.442695, %v1322_v19 }
0x1402   :  { %1584 = vtanh.f32 %v1324_v21  ;;  %v1457_v26 = vmul.f32 -1.442695, %v1324_v21 }
0x1403   :  { %1586 = vpow2.f32 %v1456_v25 }
0x1404   :  { %1588 = vpow2.f32 %v1457_v26 }
0x140d   :  { %v1583_v23 = vpop.eup %1582 }
0x140e   :  { %1334 = vrot.lane.b32.xlu0 %v1583_v23, %s1714_s2 }
0x140f   :  { %v1585_v24 = vpop.eup %1584 }
0x1410   :  { %1358 = vrot.lane.b32.xlu1 %v1585_v24, %s1714_s2  ;;  %v1587_v53 = vpop.eup %1586 }
0x1411   :  { %v1589_v63 = vpop.eup %1588  ;;  %v1328_v15 = vadd.f32 1.0, %v1587_v53 }
0x1412   :  { %v1352_v41 = vadd.f32 1.0, %v1589_v63 }
0x1413   :  { %1590 = vrcp.f32 %v1328_v15 }
0x1414   :  { %1592 = vrcp.f32 %v1352_v41 }
0x1420   :  { %v1591_v17 = vpop.eup %1590 }
0x1421   :  { %v1593_v45 = vpop.eup %1592  ;;  %v1332_v11 = vmul.f32 %v1591_v17, %v1203_v46 }
0x1422   :  { %v1356_v60 = vmul.f32 %v1593_v45, %v1227_v56 }
0x1480   :  { %v1335_v58 = vpop.permute.xlu0 %1334 }
0x1481   :  { %v1337_v42 = vmul.f32 %v1591_v17, %v1335_v58 }
0x1482   :  { %v1359_v62 = vpop.permute.xlu1 %1358 }
0x1483   :  { %1339 = vrot.lane.b32.xlu0 %v1337_v42, %s1715_s11  ;;  %v1361_v7 = vmul.f32 %v1593_v45, %v1359_v62 }
0x1485   :  { %1363 = vrot.lane.b32.xlu1 %v1361_v7, %s1715_s11 }
0x14f5   :  { %v1340_v22 = vpop.permute.xlu0 %1339 }
0x14f6   :  { %v1342_v27 = vadd.f32 %v1340_v22, %v1332_v11 }
0x14f7   :  { %v1364_v1 = vpop.permute.xlu1 %1363 }
0x14f8   :  { %1594 = vtanh.f32 %v1342_v27  ;;  %v1366_v48 = vadd.f32 %v1364_v1, %v1356_v60 }
0x14fa   :  { %1596 = vtanh.f32 %v1366_v48 }
0x1505   :  { %v1595_v54 = vpop.eup %1594 }
0x1506   :  { %1345 = vrot.lane.b32.xlu0 %v1595_v54, %s1714_s2 }
0x1507   :  { %v1597_v28 = vpop.eup %1596 }
0x1508   :  { %1369 = vrot.lane.b32.xlu1 %v1597_v28, %s1714_s2 }
0x1578   :  { %v1346_v29 = vpop.permute.xlu0 %1345 }
0x1579   :  { %v1348_v30 = vmul.f32 %v1591_v17, %v1346_v29 }
0x157a   :  { %v1370_v32 = vpop.permute.xlu1 %1369 }
0x157b   :  { %v1383_v31 = vmax.f32 %v1244_v4, %v1348_v30  ;;  %1374 = vrot.lane.b32.xlu1 %v1348_v30, %s1715_s11  ;;  %v1372_v33 = vmul.f32 %v1593_v45, %v1370_v32 }
0x157d   :  { %1386 = vrot.lane.b32.xlu0 %v1383_v31, %s1715_s11  ;;  %v1384_v59 = vmax.f32 %v1245_v10, %v1372_v33 }
0x157f   :  { %1391 = vrot.lane.b32.xlu1 %v1384_v59, %s1714_s2 }
0x1581   :  { %1379 = vrot.lane.b32.xlu0 %v1372_v33, %s1714_s2 }
0x15ed   :  { %v1375_v2 = vpop.permute.xlu1 %1374 }
0x15ee   :  { %1377 = vst.msk [vmem:[#allocation9 + $0x38] sm:$0xff] %vm90_vm0, %v1375_v2 }
0x15ef   :  { %v1387_v57 = vpop.permute.xlu0 %1386 }
0x15f0   :  { %1389 = vst.msk [vmem:[#allocation10] sm:$0xff] %vm90_vm0, %v1387_v57 }
0x15f1   :  { %v1392_v34 = vpop.permute.xlu1 %1391 }
0x15f2   :  { %1394 = vst.msk [vmem:[#allocation10] sm:$0xff] %vm398_vm1, %v1392_v34 }
0x15f3   :  { %v1380_v35 = vpop.permute.xlu0 %1379 }
0x15f4   :  { %1382 = vst.msk [vmem:[#allocation9] sm:$0xff] %vm398_vm1, %v1380_v35 }
0x15f5   :  { %1669 = shalt.err (!%p1666_p5)
}
0x15f6   :  { %1416 = dma.vmem_to_hbm [thread:$0]  %s1414_s13, 128, %s2184_s5, [#allocation11]  }
0x15f7   :  { %s1678_s19 = scalar_lea.vmem %s1401_s15, 1024  ;;  %p1683_p7 = scmp.lt.s32.totalorder %s1401_s15, %s1401_s15 }
0x15f8   :  { %p1679_p6 = scmp.ne.s32.totalorder %s1401_s15, %s1678_s19  ;;  %p1684_p8 = scmp.lt.s32.totalorder %s1678_s19, %s1678_s19 }
0x15fa   :  { %p1685_p9 = por %p1684_p8, %p1683_p7 }
0x15fc   :  { %p1686_p10 = pnand %p1685_p9, %p1679_p6 }
0x15fe   :  { %1689 = shalt.err (!%p1686_p10)
}
0x15ff   :  { %1406 = dma.vmem_to_hbm [thread:$0]  %s1401_s15, 1024, %s2183_s4, [#allocation5], %s1710_s28, %s1710_s28, %s1711_s29  }
0x1600   :  { %1702 = dma.done.wait [#allocation5], 1024  }
0x1601   :  { %1703 = vsyncadd [#allocation5], 4294966272 }
0x1602   :  { %1704 = dma.done.wait [#allocation11], 128  }
0x1603   :  { %1705 = vsyncadd [#allocation11], 4294967168 }
0x1604   :  { %1423 = vsyncpa [#allocation4], 1 }
0x1605   :  { %1424 = vsyncpa [#allocation7], 1 }
0x1606   :  { %1425 = vsyncpa [#allocation5], 1 }
0x1607   :  { %1426 = vsyncpa [#allocation11], 1 }

</bundles_post_ra>
